<compile_context>
chip_gen: v5e
topology: v5e:2x2
jax: 0.10.0
libtpu: 0.0.40
codegen_flags: <defaults>
</compile_context>

<pallas_src>
import functools

import jax
import jax.numpy as jnp
from jax.experimental import pallas as pl
from jax.experimental.pallas import tpu as pltpu


def _spike(v):
    # TODO(synk): `spiking_neuron` is unspecified in the reference (default None);
    # we use a deterministic, stateless Heaviside IF-style activation (fire if v >= 0).
    return jnp.where(v >= 0.0, 1.0, 0.0).astype(v.dtype)


def _mm(a, b):
    # Same matmul precision in kernel and reference -> identical spike decisions.
    return jnp.dot(a, b, preferred_element_type=jnp.float32,
                   precision=jax.lax.Precision.HIGHEST)


def resnet_kernel(x_ref, wts_ref,
                  w1_ref, b1_ref,        # layer1
                  wa_ref, ba_ref,        # res_block1.conv1
                  wb_ref, bb_ref,        # res_block1.conv2
                  wcd_ref, bcd_ref,      # res_block2.conv1 | downsample (fused 64->256)
                  wd_ref, bd_ref,        # res_block2.conv2
                  wfc_ref,               # fc weight, lane-padded to 128 outputs
                  o_ref,
                  *, c_blk, n_blk):
    tm = c_blk * n_blk
    x = x_ref[...].reshape(tm, x_ref.shape[-1])     # (c_blk*n_blk, in_dim)

    # layer1: Linear(in_dim, 64) + spiking neuron
    h = _spike(_mm(x, w1_ref[...]) + b1_ref[...])

    # res_block1: 64 -> 64, identity skip
    o1 = _spike(_mm(h, wa_ref[...]) + ba_ref[...])
    o1 = _spike(_mm(o1, wb_ref[...]) + bb_ref[...])
    r1 = o1 + h

    # res_block2: 64 -> 128 with Linear(64,128) downsample skip.
    # conv1 and downsample share LHS r1 -> one fused (64, 256) MXU pass.
    t2 = _mm(r1, wcd_ref[...]) + bcd_ref[...]
    o2 = _spike(t2[:, :128])                        # conv1 -> sn1
    ident = t2[:, 128:]                             # downsample(r1), no spike
    o2 = _spike(_mm(o2, wd_ref[...]) + bd_ref[...])
    r2 = o2 + ident                                 # (tm, 128)

    # Weighted reduction over this tile's window (time) axis.  wts carries the
    # timestep multiplicity (1, or in_dim for the last distinct window) and 0
    # for padded window rows.  reshape + sum: no serial add chain.
    r2_sum = jnp.sum(r2.reshape(c_blk, n_blk, 128) * wts_ref[...], axis=0)

    # fc AFTER the time reduction (fc is linear, the sum commutes): a single
    # (n_blk,128)@(128,128) matmul per grid step.  Bias (T * bfc) is added once
    # in the wrapper.  Output store is lane-dense (128 wide).
    o_ref[0, 0] = _mm(r2_sum, wfc_ref[...])


def prepare_weights(params):
    """One-time weight fusion / padding; kept out of the per-call hot path."""
    w1, b1, wa, ba, wb, bb, wc, bc, wd, bd, wds, bds, wfc, bfc = params
    wcd = jnp.concatenate([wc, wds], axis=1)                    # (64, 256)
    bcd = jnp.concatenate([bc, bds], axis=1)                    # (1, 256)
    wfc_p = jnp.pad(wfc, ((0, 0), (0, 128 - wfc.shape[1])))     # (128, 128)
    return (w1, b1, wa, ba, wb, bb, wcd, bcd, wd, bd, wfc_p), bfc


def _round_up(a, b):
    return (a + b - 1) // b * b


def _build_distinct_windows(x, in_dim):
    """The torch forward's per-timestep window, but only for DISTINCT windows.

    For t >= T - in_dim the module reuses x[:, T-in_dim:T, :]; those in_dim
    timesteps are computed once and weighted by their multiplicity later.
    """
    B, T, D = x.shape
    n_ct = max(T - in_dim, 0) + 1
    xs = [x[:, ct:ct + in_dim, :].reshape(-1, in_dim) for ct in range(n_ct)]
    return jnp.stack(xs, 0), n_ct          # (n_ct, N, in_dim), N = B*D


def resnet_forward(x, kweights, bfc, *, in_dim, target_rows=2048, max_row_block=1024):
    assert x.ndim == 3, 'dimension of x is not correct!'
    B, T, D = x.shape
    assert in_dim <= T, "in_dim must be <= T (required by the torch module's reshape)"
    N = B * D

    # TODO(synk): for T >> in_dim this still duplicates x ~in_dim x in HBM; the
    # full fix is to keep x in HBM (memory_space=pl.ANY) and gather each window
    # in-kernel with make_async_copy (each row is a contiguous in_dim run).
    x_ct, n_ct = _build_distinct_windows(x, in_dim)    # (n_ct, N, in_dim)
    last_mult = T - (n_ct - 1)                         # multiplicity of final window

    # --- row (N = B*D) tiling: multiple of 8, bounded for VMEM (v7x 64 MiB) ---
    n_pad = _round_up(N, 8)
    num_r = pl.cdiv(n_pad, max_row_block)
    n_blk = _round_up(pl.cdiv(n_pad, num_r), 8)
    n_pad = n_blk * num_r
    if n_pad != N:
        x_ct = jnp.pad(x_ct, ((0, 0), (0, n_pad - N), (0, 0)))

    # --- window (time) tiling: ~target_rows rows per grid step, but keep >= 2
    # --- grid steps so both v7x TensorCores get work.
    c_blk = max(1, min(n_ct, target_rows // n_blk))
    num_c = pl.cdiv(n_ct, c_blk)
    if num_r * num_c < 2 and c_blk > 1:
        c_blk = pl.cdiv(c_blk, 2)
        num_c = pl.cdiv(n_ct, c_blk)
    ct_pad = num_c * c_blk
    if ct_pad != n_ct:
        x_ct = jnp.pad(x_ct, ((0, ct_pad - n_ct), (0, 0), (0, 0)))

    # Per-window weights: multiplicity of the last distinct window, 0 for padding.
    ct_idx = jnp.arange(ct_pad)
    w_t = jnp.where(ct_idx == n_ct - 1, float(last_mult), 1.0)
    w_t = jnp.where(ct_idx < n_ct, w_t, 0.0).astype(jnp.float32)
    wts = jnp.broadcast_to(w_t[:, None, None], (ct_pad, 1, 128))

    def const_spec(a):
        nd = a.ndim
        return pl.BlockSpec(a.shape, lambda r, c, _nd=nd: (0,) * _nd)

    kernel = functools.partial(resnet_kernel, c_blk=c_blk, n_blk=n_blk)

    partials = pl.pallas_call(
        kernel,
        out_shape=jax.ShapeDtypeStruct((num_r, num_c, n_blk, 128), jnp.float32),
        grid_spec=pltpu.PrefetchScalarGridSpec(
            num_scalar_prefetch=0,
            grid=(num_r, num_c),
            in_specs=[pl.BlockSpec((c_blk, n_blk, in_dim), lambda r, c: (c, r, 0)),
                      pl.BlockSpec((c_blk, 1, 128), lambda r, c: (c, 0, 0))]
                     + [const_spec(a) for a in kweights],
            out_specs=pl.BlockSpec((1, 1, n_blk, 128), lambda r, c: (r, c, 0, 0)),
        ),
        compiler_params=pltpu.CompilerParams(
            dimension_semantics=("parallel", "parallel"),
            vmem_limit_bytes=48 * 1024 * 1024),
    )(x_ct, wts, *kweights)

    # Tiny cross-(window-tile) reduction, strip row/lane padding, add T * bias
    # (every one of the T timesteps contributes one fc bias).
    out = partials.sum(axis=1).reshape(n_pad, 128)[:N, :10]
    return out + float(T) * bfc


def resnet_reference(x, params, in_dim):
    """Pure-JAX reference, a literal transcription of the PyTorch forward."""
    w1, b1, wa, ba, wb, bb, wc, bc, wd, bd, wds, bds, wfc, bfc = params
    B, T, D = x.shape
    outs = []
    for t in range(T):
        if t < T - in_dim:
            xt = x[:, t:t + in_dim, :].reshape(-1, in_dim)
        else:
            xt = x[:, T - in_dim:T, :].reshape(-1, in_dim)
        h = _spike(_mm(xt, w1) + b1)
        r1 = _spike(_mm(_spike(_mm(h, wa) + ba), wb) + bb) + h
        r2 = _spike(_mm(_spike(_mm(r1, wc) + bc), wd) + bd) + (_mm(r1, wds) + bds)
        outs.append(_mm(r2, wfc) + bfc)
    return jnp.stack(outs, 0).sum(0)


def init_params(key, in_dim):
    # Linear layers in forward order; weights stored (in, out), bias (1, out).
    dims = [
        (in_dim, 64),   # layer1
        (64, 64),       # res_block1.conv1
        (64, 64),       # res_block1.conv2
        (64, 128),      # res_block2.conv1
        (128, 128),     # res_block2.conv2
        (64, 128),      # res_block2.downsample
        (128, 10),      # fc
    ]
    keys = jax.random.split(key, 2 * len(dims))
    params = []
    for i, (fan_in, fan_out) in enumerate(dims):
        bound = 1.0 / (fan_in ** 0.5)
        w = jax.random.uniform(keys[2 * i], (fan_in, fan_out), jnp.float32, -bound, bound)
        b = jax.random.uniform(keys[2 * i + 1], (1, fan_out), jnp.float32, -bound, bound)
        params += [w, b]
    return tuple(params)


if __name__ == "__main__":
    key = jax.random.PRNGKey(0)
    B, T, D = 2, 16, 4
    in_dim = 8  # small stand-in for the default 201
    k_x, k_p = jax.random.split(key)
    x = jax.random.normal(k_x, (B, T, D), dtype=jnp.float32)
    params = init_params(k_p, in_dim)
    kweights, bfc = prepare_weights(params)

    fwd = jax.jit(functools.partial(resnet_forward, in_dim=in_dim))
    out = jax.block_until_ready(fwd(x, kweights, bfc))
    ref = resnet_reference(x, params, in_dim)

    assert out.shape == (B * D, 10), out.shape
    assert jnp.allclose(out, ref, atol=1e-4, rtol=1e-4), "mismatch vs reference"
    print("KERNEL_OK")
</pallas_src>

<mosaic_0001>
module attributes {stable_mosaic.version = 11 : i64} {
  func.func @resnet_kernel(%arg0: i32, %arg1: i32, %arg2: memref<5x8x8xf32, #tpu.memory_space<vmem>>, %arg3: memref<5x1x128xf32, #tpu.memory_space<vmem>>, %arg4: memref<8x64xf32, #tpu.memory_space<vmem>>, %arg5: memref<1x64xf32, #tpu.memory_space<vmem>>, %arg6: memref<64x64xf32, #tpu.memory_space<vmem>>, %arg7: memref<1x64xf32, #tpu.memory_space<vmem>>, %arg8: memref<64x64xf32, #tpu.memory_space<vmem>>, %arg9: memref<1x64xf32, #tpu.memory_space<vmem>>, %arg10: memref<64x256xf32, #tpu.memory_space<vmem>>, %arg11: memref<1x256xf32, #tpu.memory_space<vmem>>, %arg12: memref<128x128xf32, #tpu.memory_space<vmem>>, %arg13: memref<1x128xf32, #tpu.memory_space<vmem>>, %arg14: memref<128x128xf32, #tpu.memory_space<vmem>>, %arg15: memref<1x1x8x128xf32, #tpu.memory_space<vmem>>) attributes {dimension_semantics = [#tpu.dimension_semantics<parallel>, #tpu.dimension_semantics<parallel>], iteration_bounds = array<i64: 1, 2>, scalar_prefetch = 0 : i64, scratch_operands = 0 : i64, tpu.core_type = #tpu.core_type<tc>, window_params = [{transform_indices = @transform_0, window_bounds = array<i64: 5, 8, 8>}, {transform_indices = @transform_1, window_bounds = array<i64: 5, 1, 128>}, {pipeline_mode = #tpu.pipeline_mode<synchronous>, transform_indices = @transform_2, window_bounds = array<i64: 8, 64>}, {pipeline_mode = #tpu.pipeline_mode<synchronous>, transform_indices = @transform_3, window_bounds = array<i64: 1, 64>}, {pipeline_mode = #tpu.pipeline_mode<synchronous>, transform_indices = @transform_4, window_bounds = array<i64: 64, 64>}, {pipeline_mode = #tpu.pipeline_mode<synchronous>, transform_indices = @transform_5, window_bounds = array<i64: 1, 64>}, {pipeline_mode = #tpu.pipeline_mode<synchronous>, transform_indices = @transform_6, window_bounds = array<i64: 64, 64>}, {pipeline_mode = #tpu.pipeline_mode<synchronous>, transform_indices = @transform_7, window_bounds = array<i64: 1, 64>}, {pipeline_mode = #tpu.pipeline_mode<synchronous>, transform_indices = @transform_8, window_bounds = array<i64: 64, 256>}, {pipeline_mode = #tpu.pipeline_mode<synchronous>, transform_indices = @transform_9, window_bounds = array<i64: 1, 256>}, {pipeline_mode = #tpu.pipeline_mode<synchronous>, transform_indices = @transform_10, window_bounds = array<i64: 128, 128>}, {pipeline_mode = #tpu.pipeline_mode<synchronous>, transform_indices = @transform_11, window_bounds = array<i64: 1, 128>}, {pipeline_mode = #tpu.pipeline_mode<synchronous>, transform_indices = @transform_12, window_bounds = array<i64: 128, 128>}, {transform_indices = @transform_13, window_bounds = array<i64: 1, 1, 8, 128>}]} {
    %c0 = arith.constant 0 : index
    %c0_0 = arith.constant 0 : index
    %c0_1 = arith.constant 0 : index
    %0 = vector.load %arg2[%c0, %c0_0, %c0_1] : memref<5x8x8xf32, #tpu.memory_space<vmem>>, vector<5x8x8xf32>
    %1 = vector.shape_cast %0 : vector<5x8x8xf32> to vector<40x8xf32>
    %c0_2 = arith.constant 0 : index
    %c0_3 = arith.constant 0 : index
    %2 = vector.load %arg4[%c0_2, %c0_3] : memref<8x64xf32, #tpu.memory_space<vmem>>, vector<8x64xf32>
    %cst = arith.constant dense<0.000000e+00> : vector<40x64xf32>
    %3 = tpu.matmul %1, %2, %cst {dimension_numbers = #tpu.dot_dimension_numbers<[1], [0], [0], [1], [0, 0, 1, 1], [], []>, precision = #tpu.contract_precision<fp32>} : vector<40x8xf32>, vector<8x64xf32>, vector<40x64xf32> -> vector<40x64xf32>
    %c0_4 = arith.constant 0 : index
    %c0_5 = arith.constant 0 : index
    %4 = vector.load %arg5[%c0_4, %c0_5] : memref<1x64xf32, #tpu.memory_space<vmem>>, vector<1x64xf32>
    %5 = vector.broadcast %4 : vector<1x64xf32> to vector<40x64xf32>
    %6 = arith.addf %3, %5 : vector<40x64xf32>
    %cst_6 = arith.constant 0.000000e+00 : f32
    %7 = vector.broadcast %cst_6 : f32 to vector<40x64xf32>
    %8 = arith.cmpf oge, %6, %7 : vector<40x64xf32>
    %cst_7 = arith.constant 1.000000e+00 : f32
    %cst_8 = arith.constant 0.000000e+00 : f32
    %9 = vector.broadcast %cst_7 : f32 to vector<40x64xf32>
    %10 = vector.broadcast %cst_8 : f32 to vector<40x64xf32>
    %11 = arith.select %8, %9, %10 : vector<40x64xi1>, vector<40x64xf32>
    %c0_9 = arith.constant 0 : index
    %c0_10 = arith.constant 0 : index
    %12 = vector.load %arg6[%c0_9, %c0_10] : memref<64x64xf32, #tpu.memory_space<vmem>>, vector<64x64xf32>
    %cst_11 = arith.constant dense<0.000000e+00> : vector<40x64xf32>
    %13 = tpu.matmul %11, %12, %cst_11 {dimension_numbers = #tpu.dot_dimension_numbers<[1], [0], [0], [1], [0, 0, 1, 1], [], []>, precision = #tpu.contract_precision<fp32>} : vector<40x64xf32>, vector<64x64xf32>, vector<40x64xf32> -> vector<40x64xf32>
    %c0_12 = arith.constant 0 : index
    %c0_13 = arith.constant 0 : index
    %14 = vector.load %arg7[%c0_12, %c0_13] : memref<1x64xf32, #tpu.memory_space<vmem>>, vector<1x64xf32>
    %15 = vector.broadcast %14 : vector<1x64xf32> to vector<40x64xf32>
    %16 = arith.addf %13, %15 : vector<40x64xf32>
    %cst_14 = arith.constant 0.000000e+00 : f32
    %17 = vector.broadcast %cst_14 : f32 to vector<40x64xf32>
    %18 = arith.cmpf oge, %16, %17 : vector<40x64xf32>
    %cst_15 = arith.constant 1.000000e+00 : f32
    %cst_16 = arith.constant 0.000000e+00 : f32
    %19 = vector.broadcast %cst_15 : f32 to vector<40x64xf32>
    %20 = vector.broadcast %cst_16 : f32 to vector<40x64xf32>
    %21 = arith.select %18, %19, %20 : vector<40x64xi1>, vector<40x64xf32>
    %c0_17 = arith.constant 0 : index
    %c0_18 = arith.constant 0 : index
    %22 = vector.load %arg8[%c0_17, %c0_18] : memref<64x64xf32, #tpu.memory_space<vmem>>, vector<64x64xf32>
    %cst_19 = arith.constant dense<0.000000e+00> : vector<40x64xf32>
    %23 = tpu.matmul %21, %22, %cst_19 {dimension_numbers = #tpu.dot_dimension_numbers<[1], [0], [0], [1], [0, 0, 1, 1], [], []>, precision = #tpu.contract_precision<fp32>} : vector<40x64xf32>, vector<64x64xf32>, vector<40x64xf32> -> vector<40x64xf32>
    %c0_20 = arith.constant 0 : index
    %c0_21 = arith.constant 0 : index
    %24 = vector.load %arg9[%c0_20, %c0_21] : memref<1x64xf32, #tpu.memory_space<vmem>>, vector<1x64xf32>
    %25 = vector.broadcast %24 : vector<1x64xf32> to vector<40x64xf32>
    %26 = arith.addf %23, %25 : vector<40x64xf32>
    %cst_22 = arith.constant 0.000000e+00 : f32
    %27 = vector.broadcast %cst_22 : f32 to vector<40x64xf32>
    %28 = arith.cmpf oge, %26, %27 : vector<40x64xf32>
    %cst_23 = arith.constant 1.000000e+00 : f32
    %cst_24 = arith.constant 0.000000e+00 : f32
    %29 = vector.broadcast %cst_23 : f32 to vector<40x64xf32>
    %30 = vector.broadcast %cst_24 : f32 to vector<40x64xf32>
    %31 = arith.select %28, %29, %30 : vector<40x64xi1>, vector<40x64xf32>
    %32 = arith.addf %31, %11 : vector<40x64xf32>
    %c0_25 = arith.constant 0 : index
    %c0_26 = arith.constant 0 : index
    %33 = vector.load %arg10[%c0_25, %c0_26] : memref<64x256xf32, #tpu.memory_space<vmem>>, vector<64x256xf32>
    %cst_27 = arith.constant dense<0.000000e+00> : vector<40x256xf32>
    %34 = tpu.matmul %32, %33, %cst_27 {dimension_numbers = #tpu.dot_dimension_numbers<[1], [0], [0], [1], [0, 0, 1, 1], [], []>, precision = #tpu.contract_precision<fp32>} : vector<40x64xf32>, vector<64x256xf32>, vector<40x256xf32> -> vector<40x256xf32>
    %c0_28 = arith.constant 0 : index
    %c0_29 = arith.constant 0 : index
    %35 = vector.load %arg11[%c0_28, %c0_29] : memref<1x256xf32, #tpu.memory_space<vmem>>, vector<1x256xf32>
    %36 = vector.broadcast %35 : vector<1x256xf32> to vector<40x256xf32>
    %37 = arith.addf %34, %36 : vector<40x256xf32>
    %38 = vector.extract_strided_slice %37 {offsets = [0, 0], sizes = [40, 128], strides = [1, 1]} : vector<40x256xf32> to vector<40x128xf32>
    %cst_30 = arith.constant 0.000000e+00 : f32
    %39 = vector.broadcast %cst_30 : f32 to vector<40x128xf32>
    %40 = arith.cmpf oge, %38, %39 : vector<40x128xf32>
    %cst_31 = arith.constant 1.000000e+00 : f32
    %cst_32 = arith.constant 0.000000e+00 : f32
    %41 = vector.broadcast %cst_31 : f32 to vector<40x128xf32>
    %42 = vector.broadcast %cst_32 : f32 to vector<40x128xf32>
    %43 = arith.select %40, %41, %42 : vector<40x128xi1>, vector<40x128xf32>
    %44 = vector.extract_strided_slice %37 {offsets = [0, 128], sizes = [40, 128], strides = [1, 1]} : vector<40x256xf32> to vector<40x128xf32>
    %c0_33 = arith.constant 0 : index
    %c0_34 = arith.constant 0 : index
    %45 = vector.load %arg12[%c0_33, %c0_34] : memref<128x128xf32, #tpu.memory_space<vmem>>, vector<128x128xf32>
    %cst_35 = arith.constant dense<0.000000e+00> : vector<40x128xf32>
    %46 = tpu.matmul %43, %45, %cst_35 {dimension_numbers = #tpu.dot_dimension_numbers<[1], [0], [0], [1], [0, 0, 1, 1], [], []>, precision = #tpu.contract_precision<fp32>} : vector<40x128xf32>, vector<128x128xf32>, vector<40x128xf32> -> vector<40x128xf32>
    %c0_36 = arith.constant 0 : index
    %c0_37 = arith.constant 0 : index
    %47 = vector.load %arg13[%c0_36, %c0_37] : memref<1x128xf32, #tpu.memory_space<vmem>>, vector<1x128xf32>
    %48 = vector.broadcast %47 : vector<1x128xf32> to vector<40x128xf32>
    %49 = arith.addf %46, %48 : vector<40x128xf32>
    %cst_38 = arith.constant 0.000000e+00 : f32
    %50 = vector.broadcast %cst_38 : f32 to vector<40x128xf32>
    %51 = arith.cmpf oge, %49, %50 : vector<40x128xf32>
    %cst_39 = arith.constant 1.000000e+00 : f32
    %cst_40 = arith.constant 0.000000e+00 : f32
    %52 = vector.broadcast %cst_39 : f32 to vector<40x128xf32>
    %53 = vector.broadcast %cst_40 : f32 to vector<40x128xf32>
    %54 = arith.select %51, %52, %53 : vector<40x128xi1>, vector<40x128xf32>
    %55 = arith.addf %54, %44 : vector<40x128xf32>
    %56 = vector.shape_cast %55 : vector<40x128xf32> to vector<5x8x128xf32>
    %c0_41 = arith.constant 0 : index
    %c0_42 = arith.constant 0 : index
    %c0_43 = arith.constant 0 : index
    %57 = vector.load %arg3[%c0_41, %c0_42, %c0_43] : memref<5x1x128xf32, #tpu.memory_space<vmem>>, vector<5x1x128xf32>
    %58 = vector.broadcast %57 : vector<5x1x128xf32> to vector<5x8x128xf32>
    %59 = arith.mulf %56, %58 : vector<5x8x128xf32>
    %cst_44 = arith.constant dense<0.000000e+00> : vector<8x128xf32>
    %60 = vector.multi_reduction <add>, %59, %cst_44 [0] : vector<5x8x128xf32> to vector<8x128xf32>
    %c0_45 = arith.constant 0 : index
    %c0_46 = arith.constant 0 : index
    %61 = vector.load %arg14[%c0_45, %c0_46] : memref<128x128xf32, #tpu.memory_space<vmem>>, vector<128x128xf32>
    %cst_47 = arith.constant dense<0.000000e+00> : vector<8x128xf32>
    %62 = tpu.matmul %60, %61, %cst_47 {dimension_numbers = #tpu.dot_dimension_numbers<[1], [0], [0], [1], [0, 0, 1, 1], [], []>, precision = #tpu.contract_precision<fp32>} : vector<8x128xf32>, vector<128x128xf32>, vector<8x128xf32> -> vector<8x128xf32>
    %c0_48 = arith.constant 0 : index
    %c0_49 = arith.constant 0 : index
    %c0_50 = arith.constant 0 : index
    %c0_51 = arith.constant 0 : index
    %63 = vector.load %arg15[%c0_48, %c0_49, %c0_50, %c0_51] : memref<1x1x8x128xf32, #tpu.memory_space<vmem>>, vector<1x1x8x128xf32>
    %64 = vector.shape_cast %63 : vector<1x1x8x128xf32> to vector<8x128xf32>
    %65 = vector.shape_cast %62 : vector<8x128xf32> to vector<1x1x8x128xf32>
    tpu.vector_store %arg15[%c0_48, %c0_49, %c0_50, %c0_51], %65 {strides = array<i32>} : memref<1x1x8x128xf32, #tpu.memory_space<vmem>>, vector<1x1x8x128xf32>,
    return
  }
  func.func @transform_0(%arg0: i32, %arg1: i32) -> (i32, i32, i32) {
    %c0_i32 = arith.constant 0 : i32
    %c0_i32_0 = arith.constant 0 : i32
    return %arg1, %arg0, %c0_i32 : i32, i32, i32
  }
  func.func @transform_1(%arg0: i32, %arg1: i32) -> (i32, i32, i32) {
    %c0_i32 = arith.constant 0 : i32
    %c0_i32_0 = arith.constant 0 : i32
    %c0_i32_1 = arith.constant 0 : i32
    return %arg1, %c0_i32, %c0_i32_0 : i32, i32, i32
  }
  func.func @transform_2(%arg0: i32, %arg1: i32) -> (i32, i32) {
    %c0_i32 = arith.constant 0 : i32
    %c0_i32_0 = arith.constant 0 : i32
    %c0_i32_1 = arith.constant 0 : i32
    return %c0_i32, %c0_i32_0 : i32, i32
  }
  func.func @transform_3(%arg0: i32, %arg1: i32) -> (i32, i32) {
    %c0_i32 = arith.constant 0 : i32
    %c0_i32_0 = arith.constant 0 : i32
    %c0_i32_1 = arith.constant 0 : i32
    return %c0_i32, %c0_i32_0 : i32, i32
  }
  func.func @transform_4(%arg0: i32, %arg1: i32) -> (i32, i32) {
    %c0_i32 = arith.constant 0 : i32
    %c0_i32_0 = arith.constant 0 : i32
    %c0_i32_1 = arith.constant 0 : i32
    return %c0_i32, %c0_i32_0 : i32, i32
  }
  func.func @transform_5(%arg0: i32, %arg1: i32) -> (i32, i32) {
    %c0_i32 = arith.constant 0 : i32
    %c0_i32_0 = arith.constant 0 : i32
    %c0_i32_1 = arith.constant 0 : i32
    return %c0_i32, %c0_i32_0 : i32, i32
  }
  func.func @transform_6(%arg0: i32, %arg1: i32) -> (i32, i32) {
    %c0_i32 = arith.constant 0 : i32
    %c0_i32_0 = arith.constant 0 : i32
    %c0_i32_1 = arith.constant 0 : i32
    return %c0_i32, %c0_i32_0 : i32, i32
  }
  func.func @transform_7(%arg0: i32, %arg1: i32) -> (i32, i32) {
    %c0_i32 = arith.constant 0 : i32
    %c0_i32_0 = arith.constant 0 : i32
    %c0_i32_1 = arith.constant 0 : i32
    return %c0_i32, %c0_i32_0 : i32, i32
  }
  func.func @transform_8(%arg0: i32, %arg1: i32) -> (i32, i32) {
    %c0_i32 = arith.constant 0 : i32
    %c0_i32_0 = arith.constant 0 : i32
    %c0_i32_1 = arith.constant 0 : i32
    return %c0_i32, %c0_i32_0 : i32, i32
  }
  func.func @transform_9(%arg0: i32, %arg1: i32) -> (i32, i32) {
    %c0_i32 = arith.constant 0 : i32
    %c0_i32_0 = arith.constant 0 : i32
    %c0_i32_1 = arith.constant 0 : i32
    return %c0_i32, %c0_i32_0 : i32, i32
  }
  func.func @transform_10(%arg0: i32, %arg1: i32) -> (i32, i32) {
    %c0_i32 = arith.constant 0 : i32
    %c0_i32_0 = arith.constant 0 : i32
    %c0_i32_1 = arith.constant 0 : i32
    return %c0_i32, %c0_i32_0 : i32, i32
  }
  func.func @transform_11(%arg0: i32, %arg1: i32) -> (i32, i32) {
    %c0_i32 = arith.constant 0 : i32
    %c0_i32_0 = arith.constant 0 : i32
    %c0_i32_1 = arith.constant 0 : i32
    return %c0_i32, %c0_i32_0 : i32, i32
  }
  func.func @transform_12(%arg0: i32, %arg1: i32) -> (i32, i32) {
    %c0_i32 = arith.constant 0 : i32
    %c0_i32_0 = arith.constant 0 : i32
    %c0_i32_1 = arith.constant 0 : i32
    return %c0_i32, %c0_i32_0 : i32, i32
  }
  func.func @transform_13(%arg0: i32, %arg1: i32) -> (i32, i32, i32, i32) {
    %c0_i32 = arith.constant 0 : i32
    %c0_i32_0 = arith.constant 0 : i32
    %c0_i32_1 = arith.constant 0 : i32
    return %arg0, %arg1, %c0_i32, %c0_i32_0 : i32, i32, i32, i32
  }
}

</mosaic_0001>

<bundles_post_ra>
// kernel: resnet_forward.1
= control target key start
LH: loop header
LB: loop body
LE: loop exit
PB: predicated region body
PF: predicated region fallthrough
CT: control target
= control target key end

     0   :  { %s3503_s25 = smov 0   ;;  %s3505_s26 = smov 0   ;;  %s4995_s0 = inlined_call_operand.vmem [shape: f32[10,8,8], index: 0, kind: input, shape index: {}]   ;;  %s4996_s1 = inlined_call_operand.vmem [shape: f32[10,1,128], index: 1, kind: input, shape index: {}]   ;;  %s4997_s2 = inlined_call_operand.vmem [shape: f32[8,64], index: 2, kind: input, shape index: {}]   ;;  %s4998_s3 = inlined_call_operand.vmem [shape: f32[1,64], index: 3, kind: input, shape index: {}]   ;;  %s4999_s4 = inlined_call_operand.vmem [shape: f32[64,64], index: 4, kind: input, shape index: {}]   ;;  %s5000_s5 = inlined_call_operand.vmem [shape: f32[1,64], index: 5, kind: input, shape index: {}]   ;;  %s5001_s6 = inlined_call_operand.vmem [shape: f32[64,64], index: 6, kind: input, shape index: {}]   ;;  %s5002_s7 = inlined_call_operand.vmem [shape: f32[1,64], index: 7, kind: input, shape index: {}]   ;;  %s5003_s8 = inlined_call_operand.vmem [shape: f32[64,256], index: 8, kind: input, shape index: {}]   ;;  %s5004_s9 = inlined_call_operand.vmem [shape: f32[1,256], index: 9, kind: input, shape index: {}]   ;;  %s5005_s10 = inlined_call_operand.vmem [shape: f32[128,128], index: 10, kind: input, shape index: {}]   ;;  %s5006_s11 = inlined_call_operand.vmem [shape: f32[1,128], index: 11, kind: input, shape index: {}]   ;;  %s5007_s12 = inlined_call_operand.vmem [shape: f32[128,128], index: 12, kind: input, shape index: {}]   ;;  %s5008_s13 = inlined_call_operand.vmem [shape: f32[1,2,8,128], index: 13, kind: output, shape index: {}]  }
   0x1   :  { %s3507_s27 = smov 0  }
   0x2 LB: > { %s32_s28 = sadd.s32 1, %s3425_s26  ;;  %p3320_p0 = scmp.ge.s32.totalorder %s3429_s27, 1  ;;  %s3429_s27 = sphi %s3507_s27, %s23_s27   ;;  %s3425_s26 = sphi %s3505_s26, %s5045_s26   ;;  %s3421_s25 = sphi %s3503_s25, %s5044_s25  }
   0x3   : > { %p33_p1 = scmp.ge.s32.totalorder %s32_s28, 2  ;;  %p417_p2 = scmp.lt.s32.totalorder %s3429_s27, 3 }
   0x5   : > { %s5047_s28 = smov (%p33_p1, %s32_s28), 0  ;;  %p418_p3 = pnand %p3320_p0, %p417_p2 }
   0x7   : > { %421 = sbr.rel (%p418_p3) target bundleno = 1121 (0x461), region = 72 }
   0xc   : > { %v498_v0 = vld [vmem:[%s4997_s2] sm:$0xff]  ;;  %s471_s14 = smul.u32 5, %s3421_s25  ;;  %vm503_vm0 = vcmask 64512   ;;  %v806_v41 = vld [vmem:[%s4999_s4 + $0x38] sm:$0xff]  ;;  %v805_v45 = vld [vmem:[%s4999_s4 + $0x30] sm:$0xff]  ;;  %vm811_vm1 = vcmask 523264  }
   0xd   : > { %v534_v1 = vand.u32 4294901760, %v498_v0  ;;  %v3541_v42 = vand.u32 4294901760, %v806_v41  ;;  %v3556_v47 = vand.u32 4294901760, %v805_v45  ;;  %v804_v50 = vld [vmem:[%s4999_s4 + $0x28] sm:$0xff]  ;;  %v803_v53 = vld [vmem:[%s4999_s4 + $0x20] sm:$0xff]  ;;  %v802_v57 = vld [vmem:[%s4999_s4 + $0x18] sm:$0xff] }
   0xe   : > { %p472_p4 = scmp.lt.s32.totalorder %s471_s14, 9  ;;  %v3567_v52 = vand.u32 4294901760, %v804_v50  ;;  %v3576_v56 = vand.u32 4294901760, %v803_v53  ;;  %v3584_v61 = vand.u32 4294901760, %v802_v57  ;;  %v801_v62 = vld [vmem:[%s4999_s4 + $0x10] sm:$0xff]  ;;  %p487_p5 = scmp.lt.s32.totalorder %s3421_s25, 1 }
   0xf   : > { %3370 = vmatpush.msra.mxu2 %v534_v1  ;;  %v593_v2 = vsub.f32 %v498_v0, %v534_v1  ;;  %535 = vmatpush.msra.mxu0 %v534_v1  ;;  %v3545_v43 = vsub.f32 %v806_v41, %v3541_v42  ;;  %v3560_v49 = vsub.f32 %v805_v45, %v3556_v47 }
  0x10   : > { %s5049_s14 = smov (!%p472_p4, %s471_s14), 9  ;;  %v913_v55 = vsub.f32 %v804_v50, %v3567_v52  ;;  %v919_v60 = vsub.f32 %v803_v53, %v3576_v56  ;;  %s5051_s25 = smov (!%p487_p5, %s3421_s25), 1 }
  0x11   : > { %636 = vmatpush.msrb.mxu2 %v593_v2  ;;  %v594_v3 = vand.u32 4294901760, %v593_v2  ;;  %s3321_s15 = sshll.u32 %s5049_s14, 3  ;;  %v902_v44 = vand.u32 4294901760, %v3545_v43  ;;  %v908_v51 = vand.u32 4294901760, %v3560_v49  ;;  %s4591_s17 = scalar_lea.vmem %s4996_s1, %s5049_s14 }
  0x12   : > { %s478_s18 = scalar_lea.vmem %s4995_s0, %s3321_s15  ;;  %v914_v59 = vand.u32 4294901760, %v913_v55  ;;  %v920_v0 = vand.u32 4294901760, %v919_v60 }
  0x13   : > { %v595_v4 = vsub.f32 %v593_v2, %v594_v3  ;;  %729 = vmatpush.msrb.mxu0 %v594_v3  ;;  %v496_v5 = vld [vmem:[%s478_s18 + $0x18] sm:$0xff]  ;;  %v493_v6 = vld [vmem:[%s478_s18] sm:$0xff]  ;;  %v494_v12 = vld [vmem:[%s478_s18 + $0x8] sm:$0xff]  ;;  %v903_v46 = vsub.f32 %v3545_v43, %v902_v44  ;;  %v909_v54 = vsub.f32 %v3560_v49, %v908_v51  ;;  %v845_v2 = vand.u32 4294901760, %v801_v62 }
  0x14   : > { %v497_v7 = vld [vmem:[%s478_s18 + $0x20] sm:$0xff]  ;;  %v514_v8 = vsel %vm503_vm0, %v496_v5, 0  ;;  %v505_v10 = vsel %vm503_vm0, %v493_v6, 0  ;;  %v495_v13 = vld [vmem:[%s478_s18 + $0x10] sm:$0xff]  ;;  %v508_v17 = vsel %vm503_vm0, %v494_v12, 0  ;;  %v915_v63 = vsub.f32 %v913_v55, %v914_v59  ;;  %v800_v3 = vld [vmem:[%s4999_s4 + $0x8] sm:$0xff] }
  0x15   : > { %v596_v9 = vand.u32 4294901760, %v595_v4  ;;  %v517_v11 = vsel %vm503_vm0, %v497_v7, 0  ;;  %v560_v14 = vand.u32 4294901760, %v514_v8  ;;  %v536_v15 = vand.u32 4294901760, %v505_v10 }
  0x16   : > { %v568_v16 = vand.u32 4294901760, %v517_v11  ;;  %v544_v18 = vand.u32 4294901760, %v508_v17  ;;  %v511_v22 = vsel %vm503_vm0, %v495_v13, 0  ;;  %v904_v48 = vand.u32 4294901760, %v903_v46 }
  0x17   : > { %3371 = vmatpush.msra.mxu3 %v596_v9  ;;  %597 = vmatpush.msra.mxu1 %v596_v9  ;;  %v561_v19 = vsub.f32 %v514_v8, %v560_v14  ;;  %v537_v20 = vsub.f32 %v505_v10, %v536_v15  ;;  %v552_v26 = vand.u32 4294901760, %v511_v22  ;;  %v910_v58 = vand.u32 4294901760, %v909_v54  ;;  %v799_v9 = vld [vmem:[%s4999_s4] sm:$0xff] }
  0x18   : > { %611 = vmatmul.f32.vlgmr.msra.gmra.mxu3 %v560_v14  ;;  %599 = vmatmul.f32.vlgmr.msra.gmra.mxu1 %v536_v15  ;;  %v569_v21 = vsub.f32 %v517_v11, %v568_v16  ;;  %v545_v23 = vsub.f32 %v508_v17, %v544_v18  ;;  %v916_v4 = vand.u32 4294901760, %v915_v63  ;;  %v921_v5 = vsub.f32 %v919_v60, %v920_v0 }
  0x19   : > { %679 = vmatpush.msrb.mxu3 %v534_v1  ;;  %767 = vmatpush.msrb.mxu1 %v534_v1  ;;  %v562_v24 = vand.u32 4294901760, %v561_v19  ;;  %v538_v25 = vand.u32 4294901760, %v537_v20  ;;  %v553_v35 = vsub.f32 %v511_v22, %v552_v26  ;;  %v925_v1 = vsub.f32 %v802_v57, %v3584_v61 }
  0x1a   : > { %v570_v29 = vand.u32 4294901760, %v569_v21  ;;  %v546_v30 = vand.u32 4294901760, %v545_v23  ;;  %v931_v7 = vsub.f32 %v801_v62, %v845_v2  ;;  %v847_v8 = vand.u32 4294901760, %v800_v3 }
  0x1b   : > { %v563_v27 = vsub.f32 %v561_v19, %v562_v24  ;;  %v539_v28 = vsub.f32 %v537_v20, %v538_v25  ;;  %v554_v38 = vand.u32 4294901760, %v553_v35  ;;  %1036 = vmatpush.msra.mxu1 %v3541_v42  ;;  %905 = vmatpush.msra.mxu3 %v904_v48  ;;  %v926_v6 = vand.u32 4294901760, %v925_v1 }
  0x1c   : > { %v571_v33 = vsub.f32 %v569_v21, %v570_v29  ;;  %v547_v34 = vsub.f32 %v545_v23, %v546_v30  ;;  %v922_v10 = vand.u32 4294901760, %v921_v5  ;;  %v932_v12 = vand.u32 4294901760, %v931_v7 }
  0x1d   : > { %v564_v31 = vand.u32 4294901760, %v563_v27  ;;  %v540_v32 = vand.u32 4294901760, %v539_v28  ;;  %v555_v39 = vsub.f32 %v553_v35, %v554_v38  ;;  %1038 = vmatpush.msra.mxu1 %v3556_v47  ;;  %911 = vmatpush.msra.mxu3 %v910_v58  ;;  %v927_v11 = vsub.f32 %v925_v1, %v926_v6 }
  0x1e   : > { %v572_v36 = vand.u32 4294901760, %v571_v33  ;;  %v548_v37 = vand.u32 4294901760, %v547_v34  ;;  %v849_v13 = vand.u32 4294901760, %v799_v9  ;;  %v933_v17 = vsub.f32 %v931_v7, %v932_v12  ;;  %v3613_v33 = vld [vmem:[%s4998_s3] ss:$0 sm:$0xff] }
  0x1f   : > { %565 = vmatmul.f32.vlgmr.msra.gmra.mxu2 %v564_v31  ;;  %541 = vmatmul.f32.vlgmr.msra.gmra.mxu0 %v540_v32  ;;  %v556_v40 = vand.u32 4294901760, %v555_v39 }
  0x20   : > { %615 = vmatmul.f32.gmra.mxu3 %v568_v16  ;;  %603 = vmatmul.f32.gmra.mxu1 %v544_v18 }
  0x21   : > { %836 = vmatpush.msra.mxu2 %v3541_v42  ;;  %979 = vmatpush.msra.mxu0 %v3545_v43 }
  0x22   : > { %1040 = vmatpush.msra.mxu1 %v3567_v52  ;;  %917 = vmatpush.msra.mxu3 %v916_v4 }
  0x23   : > { %838 = vmatpush.msra.mxu2 %v3556_v47  ;;  %982 = vmatpush.msra.mxu0 %v3560_v49 }
  0x24   : > { %1042 = vmatpush.msra.mxu1 %v3576_v56  ;;  %923 = vmatpush.msra.mxu3 %v922_v10 }
  0x25   : > { %840 = vmatpush.msra.mxu2 %v3567_v52  ;;  %985 = vmatpush.msra.mxu0 %v913_v55 }
  0x26   : > { %1044 = vmatpush.msra.mxu1 %v3584_v61 }
  0x27   : > { %573 = vmatmul.f32.gmra.mxu2 %v572_v36  ;;  %549 = vmatmul.f32.gmra.mxu0 %v548_v37 }
  0x28   : > { %683 = vmatmul.f32.vlgmr.msrb.gmra.mxu3 %v538_v25  ;;  %607 = vmatmul.f32.gmra.mxu1 %v552_v26 }
  0x29   : > { %842 = vmatpush.msra.mxu2 %v3576_v56  ;;  %988 = vmatpush.msra.mxu0 %v919_v60 }
  0x2a   : > { %1046 = vmatpush.msra.mxu1 %v845_v2 }
  0x2b   : > { %844 = vmatpush.msra.mxu2 %v3584_v61  ;;  %991 = vmatpush.msra.mxu0 %v925_v1 }
  0x2c   : > { %1048 = vmatpush.msra.mxu1 %v847_v8 }
  0x2d   : > { %846 = vmatpush.msra.mxu2 %v845_v2  ;;  %994 = vmatpush.msra.mxu0 %v931_v7 }
  0x2e   : > { %1050 = vmatpush.msra.mxu1 %v849_v13 }
  0x2f   : > { %639 = vmatmul.f32.vlgmr.msrb.gmra.mxu2 %v537_v20  ;;  %557 = vmatmul.f32.gmra.mxu0 %v556_v40  ;;  %v934_v20 = vand.u32 4294901760, %v933_v17 }
  0x30   : > { %689 = vmatmul.f32.gmra.mxu3 %v546_v30  ;;  %769 = vmatmul.f32.vlgmr.msrb.gmra.mxu1 %v536_v15 }
  0x31   : > { %848 = vmatpush.msra.mxu2 %v847_v8 }
  0x33   : > { %850 = vmatpush.msra.mxu2 %v849_v13 }
  0x35   : > { %1093 = vmatpush.msrb.mxu2 %v902_v44 }
  0x37   : > { %644 = vmatmul.f32.gmra.mxu2 %v545_v23  ;;  %731 = vmatmul.f32.vlgmr.msrb.gmra.mxu0 %v536_v15 }
  0x38   : > { %695 = vmatmul.f32.gmra.mxu3 %v554_v38  ;;  %773 = vmatmul.f32.gmra.mxu1 %v544_v18 }
  0x39   : > { %1097 = vmatpush.msrb.mxu2 %v908_v51 }
  0x3b   : > { %1101 = vmatpush.msrb.mxu2 %v914_v59 }
  0x3d   : > { %1105 = vmatpush.msrb.mxu2 %v920_v0 }
  0x3f   : > { %649 = vmatmul.f32.gmra.mxu2 %v553_v35  ;;  %735 = vmatmul.f32.gmra.mxu0 %v544_v18  ;;  %v943_v18 = vsub.f32 %v799_v9, %v849_v13 }
  0x40   : > { %701 = vmatmul.f32.gmra.mxu3 %v562_v24  ;;  %777 = vmatmul.f32.gmra.mxu1 %v552_v26 }
  0x41   : > { %1109 = vmatpush.msrb.mxu2 %v926_v6 }
  0x43   : > { %1113 = vmatpush.msrb.mxu2 %v932_v12 }
  0x47   : > { %654 = vmatmul.f32.gmra.mxu2 %v561_v19  ;;  %739 = vmatmul.f32.gmra.mxu0 %v552_v26 }
  0x48   : > { %707 = vmatmul.f32.gmra.mxu3 %v570_v29  ;;  %781 = vmatmul.f32.gmra.mxu1 %v560_v14 }
  0x4f   : > { %659 = vmatmul.f32.gmra.mxu2 %v569_v21  ;;  %743 = vmatmul.f32.gmra.mxu0 %v560_v14  ;;  %v937_v14 = vsub.f32 %v800_v3, %v847_v8  ;;  %v944_v21 = vand.u32 4294901760, %v943_v18 }
  0x50   : > { %785 = vmatmul.f32.gmra.mxu1 %v568_v16 }
  0x51   : > { %v938_v19 = vand.u32 4294901760, %v937_v14  ;;  %997 = vmatpush.msra.mxu0 %v937_v14  ;;  %v945_v23 = vsub.f32 %v943_v18, %v944_v21 }
  0x53   : > { %v939_v22 = vsub.f32 %v937_v14, %v938_v19  ;;  %1000 = vmatpush.msra.mxu0 %v943_v18  ;;  %v946_v26 = vand.u32 4294901760, %v945_v23  ;;  %1117 = vmatpush.msrb.mxu2 %v938_v19 }
  0x55   : > { %v940_v24 = vand.u32 4294901760, %v939_v22  ;;  %1121 = vmatpush.msrb.mxu2 %v944_v21 }
  0x57   : > { %747 = vmatmul.f32.gmra.mxu0 %v568_v16  ;;  %v928_v16 = vand.u32 4294901760, %v927_v11 }
  0x59   : > { %929 = vmatpush.msra.mxu3 %v928_v16 }
  0x5b   : > { %935 = vmatpush.msra.mxu3 %v934_v20 }
  0x5d   : > { %941 = vmatpush.msra.mxu3 %v940_v24 }
  0x5f   : > { %947 = vmatpush.msra.mxu3 %v946_v26 }
  0x61   : > { %1152 = vmatpush.msrb.mxu3 %v3541_v42 }
  0x63   : > { %1154 = vmatpush.msrb.mxu3 %v3556_v47 }
  0x65   : > { %1156 = vmatpush.msrb.mxu3 %v3567_v52  ;;  %v5009_v52 = vmov 0.0  }
  0x67   : > { %1158 = vmatpush.msrb.mxu3 %v3576_v56 }
  0x69   : > { %1160 = vmatpush.msrb.mxu3 %v3584_v61 }
  0x6b   : > { %1162 = vmatpush.msrb.mxu3 %v845_v2 }
  0x6d   : > { %1164 = vmatpush.msrb.mxu3 %v847_v8 }
  0x6f   : > { %1166 = vmatpush.msrb.mxu3 %v849_v13 }
  0x95   : > { %v600_v15 = vpop.f32.mrf.mxu1 }
  0x9b   : > { %v3601_v25 = vpop.f32.mrf.mxu3 }
  0x9c   : > { %v542_v27 = vpop.f32.mrf.mxu0 }
  0x9d   : > { %v604_v28 = vpop.f32.mrf.mxu1  ;;  %v543_v37 = vadd.f32 %v3613_v33, %v542_v27 }
  0x9f   : > { %v601_v39 = vadd.f32 %v600_v15, %v543_v37 }
  0xa2   : > { %v566_v29 = vpop.f32.mrf.mxu2 }
  0xa3   : > { %v3606_v30 = vpop.f32.mrf.mxu3  ;;  %v567_v7 = vadd.f32 %v3613_v33, %v566_v29 }
  0xa4   : > { %v550_v31 = vpop.f32.mrf.mxu0 }
  0xa5   : > { %v608_v32 = vpop.f32.mrf.mxu1  ;;  %v551_v44 = vadd.f32 %v3613_v33, %v550_v31  ;;  %v613_v14 = vadd.f32 %v3601_v25, %v567_v7 }
  0xa7   : > { %v605_v48 = vadd.f32 %v604_v28, %v551_v44 }
  0xaa   : > { %v3615_v34 = vpop.f32.mrf.mxu2 }
  0xab   : > { %v684_v35 = vpop.f32.mrf.mxu3  ;;  %v575_v23 = vadd.f32 %v3613_v33, %v3615_v34 }
  0xac   : > { %v558_v36 = vpop.f32.mrf.mxu0 }
  0xad   : > { %v770_v38 = vpop.f32.mrf.mxu1  ;;  %v559_v55 = vadd.f32 %v3613_v33, %v558_v36  ;;  %v617_v29 = vadd.f32 %v3606_v30, %v575_v23 }
  0xaf   : > { %v609_v62 = vadd.f32 %v608_v32, %v559_v55  ;;  %v1205_v55 = vld [vmem:[%s5001_s6 + $0x38] sm:$0xff] }
  0xb2   : > { %v640_v40 = vpop.f32.mrf.mxu2 }
  0xb3   : > { %v641_v41 = vadd.f32 %v640_v40, %v601_v39  ;;  %v690_v43 = vpop.f32.mrf.mxu3 }
  0xb4   : > { %v732_v42 = vpop.f32.mrf.mxu0 }
  0xb5   : > { %v685_v45 = vadd.f32 %v684_v35, %v641_v41  ;;  %v774_v47 = vpop.f32.mrf.mxu1 }
  0xb7   : > { %v733_v46 = vadd.f32 %v732_v42, %v685_v45 }
  0xb9   : > { %v771_v49 = vadd.f32 %v770_v38, %v733_v46 }
  0xba   : > { %v645_v50 = vpop.f32.mrf.mxu2 }
  0xbb   : > { %vm789_vm2 = vcmp.ge.f32.partialorder %v771_v49, 0.0  ;;  %v646_v51 = vadd.f32 %v645_v50, %v605_v48  ;;  %v696_v59 = vpop.f32.mrf.mxu3 }
  0xbc   : > { %v3620_v53 = vsel %vm789_vm2, 1.0, %v5009_v52  ;;  %v736_v54 = vpop.f32.mrf.mxu0 }
  0xbd   : > { %v691_v56 = vadd.f32 %v690_v43, %v646_v51  ;;  %3323 = vmatmul.msk.f32.vlgmr.msra.gmra.mxu3 %vm811_vm1, %v3620_v53  ;;  %v813_v57 = vsel %vm811_vm1, %v3620_v53, 0  ;;  %v778_v2 = vpop.f32.mrf.mxu1 }
  0xbe   : > { %v852_v58 = vsub.f32 %v813_v57, %v813_v57  ;;  %v1204_v57 = vld [vmem:[%s5001_s6 + $0x30] sm:$0xff] }
  0xbf   : > { %v737_v60 = vadd.f32 %v736_v54, %v691_v56  ;;  %v3683_v56 = vand.u32 4294901760, %v1205_v55 }
  0xc0   : > { %1003 = vmatmul.f32.vlgmr.msra.gmra.mxu0 %v852_v58  ;;  %v853_v61 = vand.u32 4294901760, %v852_v58 }
  0xc1   : > { %v775_v63 = vadd.f32 %v774_v47, %v737_v60  ;;  %1234 = vmatpush.msrb.mxu0 %v3683_v56  ;;  %1434 = vmatpush.msra.mxu3 %v3683_v56 }
  0xc2   : > { %v650_v0 = vpop.f32.mrf.mxu2  ;;  %1054 = vmatmul.f32.vlgmr.msra.gmra.mxu1 %v853_v61  ;;  %v854_v1 = vsub.f32 %v852_v58, %v853_v61  ;;  %v3688_v58 = vand.u32 4294901760, %v1204_v57 }
  0xc3   : > { %vm790_vm3 = vcmp.ge.f32.partialorder %v775_v63, 0.0  ;;  %v651_v3 = vadd.f32 %v650_v0, %v609_v62  ;;  %v702_v13 = vpop.f32.mrf.mxu3  ;;  %v1203_v0 = vld [vmem:[%s5001_s6 + $0x28] sm:$0xff] }
  0xc4   : > { %v3628_v4 = vsel %vm790_vm3, 1.0, %v5009_v52  ;;  %v740_v5 = vpop.f32.mrf.mxu0  ;;  %v855_v6 = vand.u32 4294901760, %v854_v1  ;;  %v3698_v61 = vsub.f32 %v1204_v57, %v3688_v58  ;;  %1236 = vmatpush.msrb.mxu0 %v3688_v58  ;;  %1436 = vmatpush.msra.mxu3 %v3688_v58 }
  0xc5   : > { %v697_v8 = vadd.f32 %v696_v59, %v651_v3  ;;  %3324 = vmatmul.msk.f32.gmra.mxu3 %vm811_vm1, %v3628_v4  ;;  %v816_v9 = vsel %vm811_vm1, %v3628_v4, 0  ;;  %v782_v22 = vpop.f32.mrf.mxu1  ;;  %v3692_v59 = vsub.f32 %v1205_v55, %v3683_v56 }
  0xc6   : > { %856 = vmatmul.f32.vlgmr.msra.gmra.mxu2 %v855_v6  ;;  %v860_v10 = vsub.f32 %v816_v9, %v816_v9  ;;  %v1306_v63 = vand.u32 4294901760, %v3698_v61 }
  0xc7   : > { %v741_v11 = vadd.f32 %v740_v5, %v697_v8  ;;  %v1300_v62 = vand.u32 4294901760, %v3692_v59  ;;  %1377 = vmatpush.msra.mxu2 %v3692_v59  ;;  %v1202_v5 = vld [vmem:[%s5001_s6 + $0x20] sm:$0xff] }
  0xc8   : > { %1008 = vmatmul.f32.gmra.mxu0 %v860_v10  ;;  %v861_v12 = vand.u32 4294901760, %v860_v10  ;;  %v1307_v3 = vsub.f32 %v3698_v61, %v1306_v63  ;;  %v3724_v8 = vand.u32 4294901760, %v1202_v5 }
  0xc9   : > { %v779_v15 = vadd.f32 %v778_v2, %v741_v11  ;;  %v1301_v1 = vsub.f32 %v3692_v59, %v1300_v62  ;;  %v3711_v2 = vand.u32 4294901760, %v1203_v0  ;;  %1380 = vmatpush.msra.mxu2 %v3698_v61 }
  0xca   : > { %v655_v16 = vpop.f32.mrf.mxu2  ;;  %1060 = vmatmul.f32.gmra.mxu1 %v861_v12  ;;  %v862_v17 = vsub.f32 %v860_v10, %v861_v12  ;;  %v1308_v9 = vand.u32 4294901760, %v1307_v3  ;;  %v1201_v10 = vld [vmem:[%s5001_s6 + $0x18] sm:$0xff]  ;;  %v1317_v12 = vsub.f32 %v1202_v5, %v3724_v8 }
  0xcb   : > { %vm791_vm4 = vcmp.ge.f32.partialorder %v779_v15, 0.0  ;;  %v656_v18 = vadd.f32 %v655_v16, %v613_v14  ;;  %v708_v35 = vpop.f32.mrf.mxu3  ;;  %v1302_v6 = vand.u32 4294901760, %v1301_v1  ;;  %1238 = vmatpush.msrb.mxu0 %v3711_v2  ;;  %v3722_v7 = vsub.f32 %v1203_v0, %v3711_v2  ;;  %1438 = vmatpush.msra.mxu3 %v3711_v2  ;;  %v1200_v15 = vld [vmem:[%s5001_s6 + $0x10] sm:$0xff] }
  0xcc   : > { %v3637_v19 = vsel %vm791_vm4, 1.0, %v5009_v52  ;;  %v744_v20 = vpop.f32.mrf.mxu0  ;;  %v863_v21 = vand.u32 4294901760, %v862_v17 }
  0xcd   : > { %v703_v24 = vadd.f32 %v702_v13, %v656_v18  ;;  %3325 = vmatmul.msk.f32.gmra.mxu3 %vm811_vm1, %v3637_v19  ;;  %v819_v25 = vsel %vm811_vm1, %v3637_v19, 0  ;;  %v786_v30 = vpop.f32.mrf.mxu1  ;;  %1303 = vmatpush.msrb.mxu1 %v1302_v6  ;;  %v1312_v11 = vand.u32 4294901760, %v3722_v7  ;;  %v3733_v13 = vand.u32 4294901760, %v1201_v10 }
  0xce   : > { %864 = vmatmul.f32.gmra.mxu2 %v863_v21  ;;  %v868_v26 = vsub.f32 %v819_v25, %v819_v25  ;;  %1240 = vmatpush.msrb.mxu0 %v3724_v8  ;;  %v1318_v18 = vand.u32 4294901760, %v1317_v12  ;;  %v1243_v21 = vand.u32 4294901760, %v1200_v15 }
  0xcf   : > { %v745_v27 = vadd.f32 %v744_v20, %v703_v24  ;;  %1383 = vmatpush.msra.mxu2 %v3722_v7  ;;  %1440 = vmatpush.msra.mxu3 %v3724_v8  ;;  %v1313_v17 = vsub.f32 %v3722_v7, %v1312_v11  ;;  %v1323_v20 = vsub.f32 %v1201_v10, %v3733_v13 }
  0xd0   : > { %1013 = vmatmul.f32.gmra.mxu0 %v868_v26  ;;  %v869_v28 = vand.u32 4294901760, %v868_v26  ;;  %1309 = vmatpush.msrb.mxu1 %v1308_v9  ;;  %v1319_v24 = vsub.f32 %v1317_v12, %v1318_v18 }
  0xd1   : > { %v783_v31 = vadd.f32 %v782_v22, %v745_v27  ;;  %1242 = vmatpush.msrb.mxu0 %v3733_v13  ;;  %1386 = vmatpush.msra.mxu2 %v1317_v12  ;;  %v1199_v22 = vld [vmem:[%s5001_s6 + $0x8] sm:$0xff]  ;;  %v1314_v23 = vand.u32 4294901760, %v1313_v17  ;;  %v1324_v25 = vand.u32 4294901760, %v1323_v20 }
  0xd2   : > { %v660_v32 = vpop.f32.mrf.mxu2  ;;  %1066 = vmatmul.f32.gmra.mxu1 %v869_v28  ;;  %v870_v36 = vsub.f32 %v868_v26, %v869_v28  ;;  %1442 = vmatpush.msra.mxu3 %v3733_v13  ;;  %v1329_v26 = vsub.f32 %v1200_v15, %v1243_v21  ;;  %v1245_v27 = vand.u32 4294901760, %v1199_v22  ;;  %v1198_v28 = vld [vmem:[%s5001_s6] sm:$0xff] }
  0xd3   : > { %vm792_vm5 = vcmp.ge.f32.partialorder %v783_v31, 0.0  ;;  %v661_v33 = vadd.f32 %v660_v32, %v617_v29  ;;  %1244 = vmatpush.msrb.mxu0 %v1243_v21  ;;  %1389 = vmatpush.msra.mxu2 %v1323_v20  ;;  %v1320_v29 = vand.u32 4294901760, %v1319_v24  ;;  %v1325_v31 = vsub.f32 %v1323_v20, %v1324_v25 }
  0xd4   : > { %v3647_v34 = vsel %vm792_vm5, 1.0, %v5009_v52  ;;  %v748_v37 = vpop.f32.mrf.mxu0  ;;  %v871_v38 = vand.u32 4294901760, %v870_v36  ;;  %1444 = vmatpush.msra.mxu3 %v1243_v21  ;;  %1315 = vmatpush.msrb.mxu1 %v1314_v23  ;;  %v1330_v32 = vand.u32 4294901760, %v1329_v26  ;;  %v1335_v36 = vsub.f32 %v1199_v22, %v1245_v27 }
  0xd5   : > { %v709_v39 = vadd.f32 %v708_v35, %v661_v33  ;;  %3326 = vmatmul.msk.f32.gmra.mxu3 %vm811_vm1, %v3647_v34  ;;  %v822_v40 = vsel %vm811_vm1, %v3647_v34, 0  ;;  %v1247_v35 = vand.u32 4294901760, %v1198_v28  ;;  %1392 = vmatpush.msra.mxu2 %v1329_v26  ;;  %v1326_v33 = vand.u32 4294901760, %v1325_v31 }
  0xd6   : > { %872 = vmatmul.f32.gmra.mxu2 %v871_v38  ;;  %v876_v41 = vsub.f32 %v822_v40, %v822_v40  ;;  %1246 = vmatpush.msrb.mxu0 %v1245_v27  ;;  %v1336_v40 = vand.u32 4294901760, %v1335_v36 }
  0xd7   : > { %v749_v42 = vadd.f32 %v748_v37, %v709_v39  ;;  %1321 = vmatpush.msrb.mxu1 %v1320_v29  ;;  %v1331_v37 = vsub.f32 %v1329_v26, %v1330_v32  ;;  %v1341_v38 = vsub.f32 %v1198_v28, %v1247_v35  ;;  %1446 = vmatpush.msra.mxu3 %v1245_v27 }
  0xd8   : > { %1018 = vmatmul.f32.gmra.mxu0 %v876_v41  ;;  %v877_v43 = vand.u32 4294901760, %v876_v41  ;;  %1395 = vmatpush.msra.mxu2 %v1335_v36 }
  0xd9   : > { %v787_v44 = vadd.f32 %v786_v30, %v749_v42  ;;  %1248 = vmatpush.msrb.mxu0 %v1247_v35  ;;  %1327 = vmatpush.msrb.mxu1 %v1326_v33  ;;  %v1342_v42 = vand.u32 4294901760, %v1341_v38 }
  0xda   : > { %1072 = vmatmul.f32.gmra.mxu1 %v877_v43  ;;  %v878_v45 = vsub.f32 %v876_v41, %v877_v43  ;;  %v1332_v41 = vand.u32 4294901760, %v1331_v37  ;;  %1448 = vmatpush.msra.mxu3 %v1247_v35  ;;  %v1337_v43 = vsub.f32 %v1335_v36, %v1336_v40 }
  0xdb   : > { %vm793_vm6 = vcmp.ge.f32.partialorder %v787_v44, 0.0  ;;  %1398 = vmatpush.msra.mxu2 %v1341_v38  ;;  %1491 = vmatpush.msra.mxu0 %v1300_v62  ;;  %v1343_v44 = vsub.f32 %v1341_v38, %v1342_v42 }
  0xdc   : > { %v3654_v46 = vsel %vm793_vm6, 1.0, %v5009_v52  ;;  %v879_v47 = vand.u32 4294901760, %v878_v45  ;;  %1333 = vmatpush.msrb.mxu1 %v1332_v41  ;;  %v1338_v45 = vand.u32 4294901760, %v1337_v43 }
  0xdd   : > { %3327 = vmatmul.msk.f32.gmra.mxu3 %vm811_vm1, %v3654_v46  ;;  %v825_v48 = vsel %vm811_vm1, %v3654_v46, 0  ;;  %1495 = vmatpush.msra.mxu0 %v1306_v63 }
  0xde   : > { %880 = vmatmul.f32.gmra.mxu2 %v879_v47  ;;  %v884_v49 = vsub.f32 %v825_v48, %v825_v48  ;;  %v1344_v47 = vand.u32 4294901760, %v1343_v44  ;;  %1339 = vmatpush.msrb.mxu1 %v1338_v45 }
  0xdf   : > { %1499 = vmatpush.msra.mxu0 %v1312_v11 }
  0xe0   : > { %1023 = vmatmul.f32.gmra.mxu0 %v884_v49  ;;  %v885_v50 = vand.u32 4294901760, %v884_v49  ;;  %1345 = vmatpush.msrb.mxu1 %v1344_v47 }
  0xe1   : > { %1503 = vmatpush.msra.mxu0 %v1318_v18 }
  0xe2   : > { %1078 = vmatmul.f32.gmra.mxu1 %v885_v50  ;;  %v886_v51 = vsub.f32 %v884_v49, %v885_v50  ;;  %v3399_v50 = vld [vmem:[%s5000_s5] ss:$0 sm:$0xff] }
  0xe3   : > { %1550 = vmatpush.msra.mxu1 %v3683_v56  ;;  %1507 = vmatpush.msra.mxu0 %v1324_v25 }
  0xe4   : > { %v887_v54 = vand.u32 4294901760, %v886_v51 }
  0xe5   : > { %3333 = vmatmul.msk.f32.vlgmr.msrb.gmra.mxu3 %vm811_vm1, %v3620_v53  ;;  %1552 = vmatpush.msra.mxu1 %v3688_v58 }
  0xe6   : > { %888 = vmatmul.f32.gmra.mxu2 %v887_v54  ;;  %1511 = vmatpush.msra.mxu0 %v1330_v32 }
  0xe7   : > { %1554 = vmatpush.msra.mxu1 %v3711_v2 }
  0xe8   : > { %1515 = vmatpush.msra.mxu0 %v1336_v40 }
  0xe9   : > { %1556 = vmatpush.msra.mxu1 %v3724_v8 }
  0xea   : > { %1519 = vmatpush.msra.mxu0 %v1342_v42 }
  0xeb   : > { %1558 = vmatpush.msra.mxu1 %v3733_v13 }
  0xed   : > { %3334 = vmatmul.msk.f32.gmra.mxu3 %vm811_vm1, %v3628_v4  ;;  %1560 = vmatpush.msra.mxu1 %v1243_v21 }
  0xee   : > { %3328 = vmatmul.msk.f32.vlgmr.msrb.gmra.mxu2 %vm811_vm1, %v3620_v53 }
  0xef   : > { %1562 = vmatpush.msra.mxu1 %v1245_v27 }
  0xf1   : > { %1564 = vmatpush.msra.mxu1 %v1247_v35 }
  0xf5   : > { %3335 = vmatmul.msk.f32.gmra.mxu3 %vm811_vm1, %v3637_v19 }
  0xf6   : > { %3329 = vmatmul.msk.f32.gmra.mxu2 %vm811_vm1, %v3628_v4 }
  0xfd   : > { %3336 = vmatmul.msk.f32.gmra.mxu3 %vm811_vm1, %v3647_v34 }
  0xfe   : > { %3330 = vmatmul.msk.f32.gmra.mxu2 %vm811_vm1, %v3637_v19 }
 0x105   : > { %3337 = vmatmul.msk.f32.gmra.mxu3 %vm811_vm1, %v3654_v46 }
 0x106   : > { %3331 = vmatmul.msk.f32.gmra.mxu2 %vm811_vm1, %v3647_v34 }
 0x10e   : > { %3332 = vmatmul.msk.f32.gmra.mxu2 %vm811_vm1, %v3654_v46 }
 0x13d   : > { %v1004_v55 = vpop.f32.mrf.mxu0 }
 0x13f   : > { %v1055_v57 = vpop.f32.mrf.mxu1 }
 0x140   : > { %v3695_v60 = vpop.f32.mrf.mxu3 }
 0x145   : > { %v1009_v0 = vpop.f32.mrf.mxu0 }
 0x147   : > { %v1061_v3 = vpop.f32.mrf.mxu1 }
 0x148   : > { %v3735_v14 = vpop.f32.mrf.mxu3 }
 0x149   : > { %v3742_v16 = vpop.f32.mrf.mxu2 }
 0x14a   : > { %v858_v56 = vadd.f32 %v3399_v50, %v3742_v16 }
 0x14c   : > { %v951_v58 = vadd.f32 %v3695_v60, %v858_v56 }
 0x14d   : > { %v1014_v11 = vpop.f32.mrf.mxu0 }
 0x14e   : > { %v1005_v63 = vadd.f32 %v1004_v55, %v951_v58 }
 0x14f   : > { %v1067_v18 = vpop.f32.mrf.mxu1 }
 0x150   : > { %v958_v39 = vpop.f32.mrf.mxu3  ;;  %v1056_v2 = vadd.f32 %v1055_v57, %v1005_v63 }
 0x151   : > { %v865_v30 = vpop.f32.mrf.mxu2 }
 0x152   : > { %v866_v62 = vadd.f32 %v3399_v50, %v865_v30 }
 0x154   : > { %v955_v1 = vadd.f32 %v3735_v14, %v866_v62 }
 0x155   : > { %v1019_v32 = vpop.f32.mrf.mxu0 }
 0x156   : > { %v1010_v9 = vadd.f32 %v1009_v0, %v955_v1 }
 0x157   : > { %v1073_v30 = vpop.f32.mrf.mxu1 }
 0x158   : > { %v962_v48 = vpop.f32.mrf.mxu3  ;;  %v1062_v13 = vadd.f32 %v1061_v3, %v1010_v9 }
 0x159   : > { %v873_v49 = vpop.f32.mrf.mxu2 }
 0x15a   : > { %v874_v7 = vadd.f32 %v3399_v50, %v873_v49 }
 0x15c   : > { %v959_v60 = vadd.f32 %v958_v39, %v874_v7 }
 0x15d   : > { %v1024_v55 = vpop.f32.mrf.mxu0 }
 0x15e   : > { %v1015_v23 = vadd.f32 %v1014_v11, %v959_v60 }
 0x160   : > { %v3765_v51 = vpop.f32.mrf.mxu3  ;;  %v1068_v29 = vadd.f32 %v1067_v18, %v1015_v23 }
 0x161   : > { %v881_v54 = vpop.f32.mrf.mxu2 }
 0x162   : > { %v882_v21 = vadd.f32 %v3399_v50, %v881_v54 }
 0x164   : > { %v963_v28 = vadd.f32 %v962_v48, %v882_v21  ;;  %v1613_v21 = vld [vmem:[%s5003_s8 + $0x60] sm:$0xff] }
 0x166   : > { %v1020_v40 = vadd.f32 %v1019_v32, %v963_v28 }
 0x168   : > { %v1169_v61 = vpop.f32.mrf.mxu3  ;;  %v1074_v45 = vadd.f32 %v1073_v30, %v1020_v40  ;;  %v1605_v30 = vld [vmem:[%s5003_s8 + $0x20] sm:$0xff] }
 0x169   : > { %v889_v59 = vpop.f32.mrf.mxu2 }
 0x16a   : > { %v890_v38 = vadd.f32 %v3399_v50, %v889_v59 }
 0x16c   : > { %v967_v44 = vadd.f32 %v3765_v51, %v890_v38 }
 0x16e   : > { %v1025_v58 = vadd.f32 %v1024_v55, %v967_v44 }
 0x170   : > { %v1173_v10 = vpop.f32.mrf.mxu3 }
 0x171   : > { %v1124_v5 = vpop.f32.mrf.mxu2 }
 0x172   : > { %v1125_v6 = vadd.f32 %v1124_v5, %v1056_v2 }
 0x174   : > { %v1170_v8 = vadd.f32 %v1169_v61, %v1125_v6  ;;  %v1079_v61 = vpop.f32.mrf.mxu1 }
 0x175   : > { %v1080_v63 = vadd.f32 %v1079_v61, %v1025_v58  ;;  %v1601_v58 = vld [vmem:[%s5003_s8] sm:$0xff] }
 0x176   : > { %vm1188_vm7 = vcmp.ge.f32.partialorder %v1170_v8, 0.0 }
 0x177   : > { %v3772_v12 = vsel %vm1188_vm7, 1.0, %v5009_v52 }
 0x178   : > { %3338 = vmatmul.msk.f32.vlgmr.msrb.gmra.mxu1 %vm811_vm1, %v3772_v12  ;;  %v1211_v14 = vsel %vm811_vm1, %v3772_v12, 0  ;;  %v1177_v25 = vpop.f32.mrf.mxu3 }
 0x179   : > { %v1128_v15 = vpop.f32.mrf.mxu2  ;;  %v1250_v16 = vsub.f32 %v1211_v14, %v1211_v14 }
 0x17a   : > { %v1129_v17 = vadd.f32 %v1128_v15, %v1062_v13 }
 0x17b   : > { %1401 = vmatmul.f32.vlgmr.msra.gmra.mxu2 %v1250_v16  ;;  %v1251_v20 = vand.u32 4294901760, %v1250_v16 }
 0x17c   : > { %v1174_v22 = vadd.f32 %v1173_v10, %v1129_v17 }
 0x17d   : > { %1452 = vmatmul.f32.vlgmr.msra.gmra.mxu3 %v1251_v20  ;;  %v1252_v24 = vsub.f32 %v1250_v16, %v1251_v20 }
 0x17e   : > { %vm1189_vm8 = vcmp.ge.f32.partialorder %v1174_v22, 0.0  ;;  %v3826_v22 = vand.u32 4294901760, %v1613_v21 }
 0x17f   : > { %v3779_v26 = vsel %vm1189_vm8, 1.0, %v5009_v52  ;;  %v1253_v27 = vand.u32 4294901760, %v1252_v24  ;;  %v1611_v24 = vld [vmem:[%s5003_s8 + $0x50] sm:$0xff] }
 0x180   : > { %3339 = vmatmul.msk.f32.gmra.mxu1 %vm811_vm1, %v3779_v26  ;;  %v1214_v31 = vsel %vm811_vm1, %v3779_v26, 0  ;;  %v1181_v48 = vpop.f32.mrf.mxu3 }
 0x181   : > { %v1132_v35 = vpop.f32.mrf.mxu2  ;;  %1254 = vmatmul.f32.vlgmr.msrb.gmra.mxu0 %v1253_v27  ;;  %v1258_v36 = vsub.f32 %v1214_v31, %v1214_v31  ;;  %v3840_v27 = vand.u32 4294901760, %v1611_v24  ;;  %v1609_v31 = vld [vmem:[%s5003_s8 + $0x40] sm:$0xff] }
 0x182   : > { %v1133_v33 = vadd.f32 %v1132_v35, %v1068_v29 }
 0x183   : > { %1406 = vmatmul.f32.gmra.mxu2 %v1258_v36  ;;  %v1259_v37 = vand.u32 4294901760, %v1258_v36  ;;  %v3851_v35 = vsub.f32 %v1611_v24, %v3840_v27 }
 0x184   : > { %v1178_v39 = vadd.f32 %v1177_v25, %v1133_v33  ;;  %v1607_v33 = vld [vmem:[%s5003_s8 + $0x30] sm:$0xff] }
 0x185   : > { %1458 = vmatmul.f32.gmra.mxu3 %v1259_v37  ;;  %v1260_v41 = vsub.f32 %v1258_v36, %v1259_v37  ;;  %v3853_v36 = vand.u32 4294901760, %v1609_v31  ;;  %v1725_v38 = vand.u32 4294901760, %v3851_v35  ;;  %v3867_v40 = vand.u32 4294901760, %v1607_v33 }
 0x186   : > { %vm1190_vm9 = vcmp.ge.f32.partialorder %v1178_v39, 0.0 }
 0x187   : > { %v1195_v42 = vsel %vm1190_vm9, 1.0, %v5009_v52  ;;  %v1261_v43 = vand.u32 4294901760, %v1260_v41  ;;  %v1730_v39 = vsub.f32 %v1609_v31, %v3853_v36  ;;  %v1736_v44 = vsub.f32 %v1607_v33, %v3867_v40  ;;  %v1614_v33 = vld [vmem:[%s5003_s8 + $0x68] sm:$0xff] }
 0x188   : > { %3340 = vmatmul.msk.f32.gmra.mxu1 %vm811_vm1, %v1195_v42  ;;  %v1217_v47 = vsel %vm811_vm1, %v1195_v42, 0  ;;  %v1185_v5 = vpop.f32.mrf.mxu3 }
 0x189   : > { %v1136_v49 = vpop.f32.mrf.mxu2  ;;  %1262 = vmatmul.f32.gmra.mxu0 %v1261_v43  ;;  %v1266_v50 = vsub.f32 %v1217_v47, %v1217_v47  ;;  %v1731_v43 = vand.u32 4294901760, %v1730_v39  ;;  %v1603_v47 = vld [vmem:[%s5003_s8 + $0x10] sm:$0xff] }
 0x18a   : > { %v1137_v54 = vadd.f32 %v1136_v49, %v1074_v45  ;;  %v3876_v45 = vand.u32 4294901760, %v1605_v30 }
 0x18b   : > { %1411 = vmatmul.f32.gmra.mxu2 %v1266_v50  ;;  %v1267_v56 = vand.u32 4294901760, %v1266_v50 }
 0x18c   : > { %v1182_v57 = vadd.f32 %v1181_v48, %v1137_v54  ;;  %v1658_v54 = vand.u32 4294901760, %v1603_v47 }
 0x18d   : > { %1464 = vmatmul.f32.gmra.mxu3 %v1267_v56  ;;  %v1268_v59 = vsub.f32 %v1266_v50, %v1267_v56  ;;  %v1732_v50 = vsub.f32 %v1730_v39, %v1731_v43  ;;  %v1737_v56 = vand.u32 4294901760, %v1736_v44 }
 0x18e   : > { %vm1191_vm10 = vcmp.ge.f32.partialorder %v1182_v57, 0.0  ;;  %v1742_v57 = vsub.f32 %v1605_v30, %v3876_v45  ;;  %v1748_v61 = vsub.f32 %v1603_v47, %v1658_v54 }
 0x18f   : > { %v1196_v51 = vsel %vm1191_vm10, 1.0, %v5009_v52  ;;  %v1269_v62 = vand.u32 4294901760, %v1268_v59  ;;  %v1733_v59 = vand.u32 4294901760, %v1732_v50 }
 0x190   : > { %3341 = vmatmul.msk.f32.gmra.mxu1 %vm811_vm1, %v1196_v51  ;;  %v1220_v0 = vsel %vm811_vm1, %v1196_v51, 0 }
 0x191   : > { %v1140_v1 = vpop.f32.mrf.mxu2  ;;  %1270 = vmatmul.f32.gmra.mxu0 %v1269_v62  ;;  %v1274_v2 = vsub.f32 %v1220_v0, %v1220_v0  ;;  %v1738_v62 = vsub.f32 %v1736_v44, %v1737_v56  ;;  %v1749_v0 = vand.u32 4294901760, %v1748_v61 }
 0x192   : > { %v1141_v3 = vadd.f32 %v1140_v1, %v1080_v63  ;;  %v1743_v63 = vand.u32 4294901760, %v1742_v57 }
 0x193   : > { %1416 = vmatmul.f32.gmra.mxu2 %v1274_v2  ;;  %v1275_v6 = vand.u32 4294901760, %v1274_v2 }
 0x194   : > { %v1186_v7 = vadd.f32 %v1185_v5, %v1141_v3  ;;  %v1744_v3 = vsub.f32 %v1742_v57, %v1743_v63  ;;  %v1750_v5 = vsub.f32 %v1748_v61, %v1749_v0 }
 0x195   : > { %1470 = vmatmul.f32.gmra.mxu3 %v1275_v6  ;;  %v1276_v8 = vsub.f32 %v1274_v2, %v1275_v6  ;;  %v1739_v2 = vand.u32 4294901760, %v1738_v62 }
 0x196   : > { %vm1192_vm11 = vcmp.ge.f32.partialorder %v1186_v7, 0.0  ;;  %v1745_v7 = vand.u32 4294901760, %v1744_v3 }
 0x197   : > { %v1197_v9 = vsel %vm1192_vm11, 1.0, %v5009_v52  ;;  %v1277_v10 = vand.u32 4294901760, %v1276_v8 }
 0x198   : > { %3342 = vmatmul.msk.f32.gmra.mxu1 %vm811_vm1, %v1197_v9  ;;  %v1223_v11 = vsel %vm811_vm1, %v1197_v9, 0 }
 0x199   : > { %1278 = vmatmul.f32.gmra.mxu0 %v1277_v10  ;;  %v1282_v60 = vsub.f32 %v1223_v11, %v1223_v11 }
 0x19b   : > { %1421 = vmatmul.f32.gmra.mxu2 %v1282_v60  ;;  %v1283_v13 = vand.u32 4294901760, %v1282_v60 }
 0x19d   : > { %1476 = vmatmul.f32.gmra.mxu3 %v1283_v13  ;;  %v1284_v14 = vsub.f32 %v1282_v60, %v1283_v13  ;;  %v3900_v13 = vld [vmem:[%s5002_s7] ss:$0 sm:$0xff] }
 0x19f   : > { %v1285_v15 = vand.u32 4294901760, %v1284_v14 }
 0x1a0   : > { %3348 = vmatmul.msk.f32.vlgmr.msra.gmra.mxu1 %vm811_vm1, %v3772_v12 }
 0x1a1   : > { %1286 = vmatmul.f32.gmra.mxu0 %v1285_v15 }
 0x1a8   : > { %3349 = vmatmul.msk.f32.gmra.mxu1 %vm811_vm1, %v3779_v26 }
 0x1a9   : > { %3343 = vmatmul.msk.f32.vlgmr.msra.gmra.mxu0 %vm811_vm1, %v3772_v12  ;;  %v1615_v12 = vld [vmem:[%s5003_s8 + $0x70] sm:$0xff] }
 0x1aa   : > { %v3814_v17 = vand.u32 4294901760, %v1615_v12 }
 0x1ac   : > { %1647 = vmatpush.msrb.mxu2 %v3814_v17  ;;  %v3818_v18 = vsub.f32 %v1615_v12, %v3814_v17  ;;  %1847 = vmatpush.msrb.mxu1 %v3814_v17 }
 0x1ae   : > { %v1713_v20 = vand.u32 4294901760, %v3818_v18  ;;  %1790 = vmatpush.msrb.mxu0 %v3818_v18  ;;  %1649 = vmatpush.msrb.mxu2 %v3826_v22 }
 0x1af   : > { %1849 = vmatpush.msrb.mxu1 %v3826_v22 }
 0x1b0   : > { %3350 = vmatmul.msk.f32.gmra.mxu1 %vm811_vm1, %v1195_v42  ;;  %v1714_v23 = vsub.f32 %v3818_v18, %v1713_v20  ;;  %1651 = vmatpush.msrb.mxu2 %v3840_v27 }
 0x1b1   : > { %3344 = vmatmul.msk.f32.gmra.mxu0 %vm811_vm1, %v3779_v26  ;;  %v3838_v26 = vsub.f32 %v1613_v21, %v3826_v22  ;;  %1851 = vmatpush.msrb.mxu1 %v3840_v27 }
 0x1b2   : > { %v1715_v29 = vand.u32 4294901760, %v1714_v23  ;;  %1653 = vmatpush.msrb.mxu2 %v3853_v36 }
 0x1b3   : > { %v1719_v32 = vand.u32 4294901760, %v3838_v26  ;;  %1793 = vmatpush.msrb.mxu0 %v3838_v26  ;;  %1853 = vmatpush.msrb.mxu1 %v3853_v36 }
 0x1b4   : > { %1716 = vmatpush.msrb.mxu3 %v1715_v29  ;;  %1655 = vmatpush.msrb.mxu2 %v3867_v40 }
 0x1b5   : > { %v1720_v37 = vsub.f32 %v3838_v26, %v1719_v32  ;;  %1796 = vmatpush.msrb.mxu0 %v3851_v35  ;;  %1855 = vmatpush.msrb.mxu1 %v3867_v40 }
 0x1b6   : > { %1657 = vmatpush.msrb.mxu2 %v3876_v45 }
 0x1b7   : > { %v1721_v41 = vand.u32 4294901760, %v1720_v37  ;;  %1799 = vmatpush.msrb.mxu0 %v1730_v39  ;;  %1857 = vmatpush.msrb.mxu1 %v3876_v45 }
 0x1b8   : > { %3351 = vmatmul.msk.f32.gmra.mxu1 %vm811_vm1, %v1196_v51  ;;  %1659 = vmatpush.msrb.mxu2 %v1658_v54 }
 0x1b9   : > { %3345 = vmatmul.msk.f32.gmra.mxu0 %vm811_vm1, %v1195_v42  ;;  %v1726_v42 = vsub.f32 %v3851_v35, %v1725_v38  ;;  %1722 = vmatpush.msrb.mxu3 %v1721_v41 }
 0x1ba   : > { %1802 = vmatpush.msrb.mxu0 %v1736_v44  ;;  %1859 = vmatpush.msrb.mxu1 %v1658_v54 }
 0x1bb   : > { %v1727_v49 = vand.u32 4294901760, %v1726_v42 }
 0x1bc   : > { %1805 = vmatpush.msrb.mxu0 %v1742_v57 }
 0x1bd   : > { %1728 = vmatpush.msrb.mxu3 %v1727_v49 }
 0x1be   : > { %1808 = vmatpush.msrb.mxu0 %v1748_v61 }
 0x1bf   : > { %1734 = vmatpush.msrb.mxu3 %v1733_v59  ;;  %v1608_v59 = vld [vmem:[%s5003_s8 + $0x38] sm:$0xff] }
 0x1c0   : > { %3352 = vmatmul.msk.f32.gmra.mxu1 %vm811_vm1, %v1197_v9 }
 0x1c1   : > { %3346 = vmatmul.msk.f32.gmra.mxu0 %vm811_vm1, %v1196_v51  ;;  %v1660_v51 = vand.u32 4294901760, %v1601_v58  ;;  %1740 = vmatpush.msrb.mxu3 %v1739_v2 }
 0x1c3   : > { %v1754_v1 = vsub.f32 %v1601_v58, %v1660_v51  ;;  %1661 = vmatpush.msrb.mxu2 %v1660_v51  ;;  %1861 = vmatpush.msrb.mxu1 %v1660_v51 }
 0x1c4   : > { %1746 = vmatpush.msrb.mxu3 %v1745_v7 }
 0x1c5   : > { %v1755_v6 = vand.u32 4294901760, %v1754_v1  ;;  %1904 = vmatpush.msra.mxu2 %v1713_v20  ;;  %1811 = vmatpush.msrb.mxu0 %v1754_v1 }
 0x1c7   : > { %v1756_v10 = vsub.f32 %v1754_v1, %v1755_v6  ;;  %1908 = vmatpush.msra.mxu2 %v1719_v32 }
 0x1c9   : > { %3347 = vmatmul.msk.f32.gmra.mxu0 %vm811_vm1, %v1197_v9  ;;  %v1751_v9 = vand.u32 4294901760, %v1750_v5  ;;  %v1757_v60 = vand.u32 4294901760, %v1756_v10  ;;  %1912 = vmatpush.msra.mxu2 %v1725_v38 }
 0x1cb   : > { %1752 = vmatpush.msrb.mxu3 %v1751_v9  ;;  %1916 = vmatpush.msra.mxu2 %v1731_v43 }
 0x1cd   : > { %1758 = vmatpush.msrb.mxu3 %v1757_v60  ;;  %1920 = vmatpush.msra.mxu2 %v1737_v56 }
 0x1cf   : > { %1963 = vmatpush.msra.mxu3 %v3814_v17  ;;  %1924 = vmatpush.msra.mxu2 %v1743_v63 }
 0x1d1   : > { %1965 = vmatpush.msra.mxu3 %v3826_v22  ;;  %1928 = vmatpush.msra.mxu2 %v1749_v0  ;;  %v3965_v0 = vand.u32 4294901760, %v1608_v59 }
 0x1d3   : > { %1967 = vmatpush.msra.mxu3 %v3840_v27  ;;  %1932 = vmatpush.msra.mxu2 %v1755_v6 }
 0x1d5   : > { %1969 = vmatpush.msra.mxu3 %v3853_v36 }
 0x1d7   : > { %1971 = vmatpush.msra.mxu3 %v3867_v40  ;;  %v1612_v40 = vld [vmem:[%s5003_s8 + $0x58] sm:$0xff] }
 0x1d8   : > { %v3937_v43 = vand.u32 4294901760, %v1612_v40 }
 0x1d9   : > { %1973 = vmatpush.msra.mxu3 %v3876_v45 }
 0x1da   : > { %v3955_v58 = vsub.f32 %v1612_v40, %v3937_v43 }
 0x1db   : > { %1975 = vmatpush.msra.mxu3 %v1658_v54 }
 0x1dc   : > { %v2086_v3 = vand.u32 4294901760, %v3955_v58 }
 0x1dd   : > { %1977 = vmatpush.msra.mxu3 %v1660_v51 }
 0x1de   : > { %v2087_v60 = vsub.f32 %v3955_v58, %v2086_v3 }
 0x1f5   : > { %v3809_v16 = vpop.f32.mrf.mxu1 }
 0x1fd   : > { %v3834_v25 = vpop.f32.mrf.mxu1 }
 0x1fe   : > { %v3843_v28 = vpop.f32.mrf.mxu0  ;;  %v1402_v14 = vpop.f32.mrf.mxu2 }
 0x1ff   : > { %v1256_v18 = vadd.f32 %v3900_v13, %v3843_v28 }
 0x200   : > { %v1453_v17 = vpop.f32.mrf.mxu3 }
 0x201   : > { %v1349_v20 = vadd.f32 %v3809_v16, %v1256_v18  ;;  %v1616_v16 = vld [vmem:[%s5003_s8 + $0x78] sm:$0xff] }
 0x202   : > { %v3920_v32 = vand.u32 4294901760, %v1616_v16  ;;  %v1604_v18 = vld [vmem:[%s5003_s8 + $0x18] sm:$0xff] }
 0x203   : > { %v1403_v26 = vadd.f32 %v1402_v14, %v1349_v20 }
 0x204   : > { %2008 = vmatpush.msra.mxu0 %v3920_v32  ;;  %v3928_v38 = vsub.f32 %v1616_v16, %v3920_v32 }
 0x205   : > { %v3882_v48 = vpop.f32.mrf.mxu1  ;;  %v1454_v31 = vadd.f32 %v1453_v17, %v1403_v26  ;;  %v2088_v26 = vand.u32 4294901760, %v2087_v60 }
 0x206   : > { %v1263_v55 = vpop.f32.mrf.mxu0  ;;  %v1407_v22 = vpop.f32.mrf.mxu2  ;;  %v2074_v42 = vand.u32 4294901760, %v3928_v38 }
 0x207   : > { %v1264_v23 = vadd.f32 %v3900_v13, %v1263_v55 }
 0x208   : > { %v1459_v28 = vpop.f32.mrf.mxu3  ;;  %v2075_v49 = vsub.f32 %v3928_v38, %v2074_v42 }
 0x209   : > { %v1353_v29 = vadd.f32 %v3834_v25, %v1264_v23  ;;  %v3930_v25 = vand.u32 4294901760, %v1614_v33 }
 0x20a   : > { %v2076_v62 = vand.u32 4294901760, %v2075_v49 }
 0x20b   : > { %v1408_v39 = vadd.f32 %v1407_v22, %v1353_v29  ;;  %2010 = vmatpush.msra.mxu0 %v3930_v25  ;;  %v3940_v44 = vsub.f32 %v1614_v33, %v3930_v25  ;;  %v3992_v22 = vand.u32 4294901760, %v1604_v18 }
 0x20c   : > { %2077 = vmatpush.msra.mxu1 %v2076_v62 }
 0x20d   : > { %v3892_v8 = vpop.f32.mrf.mxu1  ;;  %2012 = vmatpush.msra.mxu0 %v3937_v43  ;;  %v2080_v50 = vand.u32 4294901760, %v3940_v44  ;;  %v1460_v55 = vadd.f32 %v1459_v28, %v1408_v39  ;;  %v1602_v28 = vld [vmem:[%s5003_s8 + $0x8] sm:$0xff] }
 0x20e   : > { %v1271_v11 = vpop.f32.mrf.mxu0  ;;  %v1412_v30 = vpop.f32.mrf.mxu2  ;;  %v4010_v16 = vand.u32 4294901760, %v1602_v28 }
 0x20f   : > { %v1272_v27 = vadd.f32 %v3900_v13, %v1271_v11  ;;  %v2081_v63 = vsub.f32 %v3940_v44, %v2080_v50 }
 0x210   : > { %v1465_v61 = vpop.f32.mrf.mxu3 }
 0x211   : > { %v1357_v35 = vadd.f32 %v3882_v48, %v1272_v27  ;;  %v1610_v48 = vld [vmem:[%s5003_s8 + $0x48] sm:$0xff]  ;;  %v2082_v9 = vand.u32 4294901760, %v2081_v63 }
 0x212   : > { %v3950_v54 = vand.u32 4294901760, %v1610_v48 }
 0x213   : > { %v1413_v45 = vadd.f32 %v1412_v30, %v1357_v35  ;;  %2083 = vmatpush.msra.mxu1 %v2082_v9 }
 0x214   : > { %2014 = vmatpush.msra.mxu0 %v3950_v54  ;;  %v3969_v5 = vsub.f32 %v1610_v48, %v3950_v54 }
 0x215   : > { %v3903_v15 = vpop.f32.mrf.mxu1  ;;  %v1466_v1 = vadd.f32 %v1465_v61, %v1413_v45  ;;  %2089 = vmatpush.msra.mxu1 %v2088_v26  ;;  %v4031_v45 = vsub.f32 %v1602_v28, %v4010_v16 }
 0x216   : > { %v1279_v12 = vpop.f32.mrf.mxu0  ;;  %2016 = vmatpush.msra.mxu0 %v3965_v0  ;;  %v2092_v14 = vand.u32 4294901760, %v3969_v5 }
 0x217   : > { %v1280_v56 = vadd.f32 %v3900_v13, %v1279_v12  ;;  %v3985_v12 = vsub.f32 %v1608_v59, %v3965_v0  ;;  %v2116_v62 = vand.u32 4294901760, %v4031_v45 }
 0x218   : > { %v2093_v27 = vsub.f32 %v3969_v5, %v2092_v14 }
 0x219   : > { %v1361_v17 = vadd.f32 %v3892_v8, %v1280_v56  ;;  %v2098_v8 = vand.u32 4294901760, %v3985_v12 }
 0x21b   : > { %v2099_v39 = vsub.f32 %v3985_v12, %v2098_v8 }
 0x21d   : > { %v1567_v24 = vpop.f32.mrf.mxu1  ;;  %v2100_v49 = vand.u32 4294901760, %v2099_v39 }
 0x21e   : > { %v3912_v21 = vpop.f32.mrf.mxu0 }
 0x21f   : > { %v1288_v63 = vadd.f32 %v3900_v13, %v3912_v21 }
 0x221   : > { %v1365_v60 = vadd.f32 %v3903_v15, %v1288_v63 }
 0x225   : > { %v1571_v47 = vpop.f32.mrf.mxu1 }
 0x226   : > { %v1522_v36 = vpop.f32.mrf.mxu0 }
 0x227   : > { %v1523_v37 = vadd.f32 %v1522_v36, %v1454_v31  ;;  %v4013_v31 = vsub.f32 %v1604_v18, %v3992_v22 }
 0x229   : > { %v1568_v41 = vadd.f32 %v1567_v24, %v1523_v37  ;;  %v2094_v37 = vand.u32 4294901760, %v2093_v27 }
 0x22b   : > { %vm1586_vm12 = vcmp.ge.f32.partialorder %v1568_v41, 0.0  ;;  %v2110_v41 = vand.u32 4294901760, %v4013_v31  ;;  %2095 = vmatpush.msra.mxu1 %v2094_v37 }
 0x22c   : > { %v1591_v57 = vsel %vm1586_vm12, 1.0, %v5009_v52 }
 0x22d   : > { %v1596_v51 = vadd.f32 %v1591_v57, %v3620_v53  ;;  %v1606_v53 = vld [vmem:[%s5003_s8 + $0x28] sm:$0xff]  ;;  %v1575_v35 = vpop.f32.mrf.mxu1  ;;  %v2111_v59 = vsub.f32 %v4013_v31, %v2110_v41  ;;  %2101 = vmatpush.msra.mxu1 %v2100_v49 }
 0x22e   : > { %v1526_v2 = vpop.f32.mrf.mxu0  ;;  %v3976_v10 = vand.u32 4294901760, %v1606_v53 }
 0x22f   : > { %v1624_v6 = vsel %vm811_vm1, %v1596_v51, 0  ;;  %v1527_v7 = vadd.f32 %v1526_v2, %v1460_v55  ;;  %v2112_v2 = vand.u32 4294901760, %v2111_v59 }
 0x230   : > { %v3978_v11 = vand.u32 4294901760, %v1624_v6  ;;  %2018 = vmatpush.msra.mxu0 %v3976_v10  ;;  %v3995_v23 = vsub.f32 %v1606_v53, %v3976_v10  ;;  %v1471_v53 = vpop.f32.mrf.mxu3 }
 0x231   : > { %v1572_v20 = vadd.f32 %v1571_v47, %v1527_v7  ;;  %v1417_v47 = vpop.f32.mrf.mxu2 }
 0x232   : > { %1760 = vmatmul.f32.vlgmr.msrb.gmra.mxu3 %v3978_v11  ;;  %v3999_v24 = vsub.f32 %v1624_v6, %v3978_v11  ;;  %2020 = vmatpush.msra.mxu0 %v3992_v22  ;;  %v2104_v29 = vand.u32 4294901760, %v3995_v23 }
 0x233   : > { %vm1587_vm13 = vcmp.ge.f32.partialorder %v1572_v20, 0.0  ;;  %2208 = vmatpush.msrb.mxu3 %v3920_v32 }
 0x234   : > { %v1592_v36 = vsel %vm1587_vm13, 1.0, %v5009_v52  ;;  %1814 = vmatmul.f32.vlgmr.msrb.gmra.mxu0 %v3999_v24  ;;  %v4019_v33 = vand.u32 4294901760, %v3999_v24  ;;  %v2105_v30 = vsub.f32 %v3995_v23, %v2104_v29 }
 0x235   : > { %v1597_v40 = vadd.f32 %v1592_v36, %v3628_v4  ;;  %2022 = vmatpush.msra.mxu0 %v4010_v16  ;;  %2210 = vmatpush.msrb.mxu3 %v3930_v25 }
 0x236   : > { %v1530_v48 = vpop.f32.mrf.mxu0  ;;  %1865 = vmatmul.f32.vlgmr.msrb.gmra.mxu1 %v4019_v33  ;;  %v1665_v4 = vsub.f32 %v3999_v24, %v4019_v33  ;;  %v2106_v57 = vand.u32 4294901760, %v2105_v30 }
 0x237   : > { %2265 = vmatpush.msrb.mxu0 %v2074_v42  ;;  %v1627_v55 = vsel %vm811_vm1, %v1597_v40, 0  ;;  %v1531_v56 = vadd.f32 %v1530_v48, %v1466_v1  ;;  %2212 = vmatpush.msrb.mxu3 %v3937_v43  ;;  %v1418_v42 = vadd.f32 %v1417_v47, %v1361_v17  ;;  %v1579_v17 = vpop.f32.mrf.mxu1 }
 0x238   : > { %v4044_v61 = vand.u32 4294901760, %v1627_v55  ;;  %v4046_v51 = vand.u32 4294901760, %v1665_v4  ;;  %2107 = vmatpush.msra.mxu1 %v2106_v57  ;;  %v2383_v4 = vld [vmem:[%s5005_s10 + $0x68] sm:$0xff]  ;;  %v2382_v57 = vld [vmem:[%s5005_s10 + $0x60] sm:$0xff] }
 0x239   : > { %2269 = vmatpush.msrb.mxu0 %v2080_v50  ;;  %v1576_v1 = vadd.f32 %v1575_v35, %v1531_v56  ;;  %2214 = vmatpush.msrb.mxu3 %v3950_v54  ;;  %v2117_v50 = vsub.f32 %v4031_v45, %v2116_v62  ;;  %v1472_v9 = vadd.f32 %v1471_v53, %v1418_v42  ;;  %v4187_v56 = vand.u32 4294901760, %v2383_v4  ;;  %v2381_v42 = vld [vmem:[%s5005_s10 + $0x58] sm:$0xff] }
 0x23a   : > { %1667 = vmatmul.f32.vlgmr.msrb.gmra.mxu2 %v4046_v51  ;;  %1764 = vmatmul.f32.gmra.mxu3 %v4044_v61  ;;  %v4057_v6 = vsub.f32 %v1627_v55, %v4044_v61 }
 0x23b   : > { %vm1588_vm14 = vcmp.ge.f32.partialorder %v1576_v1, 0.0  ;;  %2273 = vmatpush.msrb.mxu0 %v2086_v3  ;;  %v2118_v7 = vand.u32 4294901760, %v2117_v50  ;;  %2151 = vmatpush.msrb.mxu2 %v3928_v38  ;;  %v2380_v50 = vld [vmem:[%s5005_s10 + $0x50] sm:$0xff] }
 0x23c   : > { %v1593_v13 = vsel %vm1588_vm14, 1.0, %v5009_v52  ;;  %1819 = vmatmul.f32.gmra.mxu0 %v4057_v6  ;;  %v4067_v21 = vand.u32 4294901760, %v4057_v6  ;;  %2113 = vmatpush.msra.mxu1 %v2112_v2 }
 0x23d   : > { %v1598_v18 = vadd.f32 %v1593_v13, %v3637_v19  ;;  %2216 = vmatpush.msrb.mxu3 %v3965_v0  ;;  %2277 = vmatpush.msrb.mxu0 %v2092_v14  ;;  %v1422_v19 = vpop.f32.mrf.mxu2 }
 0x23e   : > { %v1534_v3 = vpop.f32.mrf.mxu0  ;;  %1871 = vmatmul.f32.gmra.mxu1 %v4067_v21  ;;  %v1673_v20 = vsub.f32 %v4057_v6, %v4067_v21  ;;  %2154 = vmatpush.msrb.mxu2 %v3940_v44  ;;  %v1423_v28 = vadd.f32 %v1422_v19, %v1365_v60  ;;  %v2378_v19 = vld [vmem:[%s5005_s10 + $0x40] sm:$0xff] }
 0x23f   : > { %v1630_v38 = vsel %vm811_vm1, %v1598_v18, 0  ;;  %v1535_v26 = vadd.f32 %v1534_v3, %v1472_v9  ;;  %2119 = vmatpush.msra.mxu1 %v2118_v7  ;;  %2218 = vmatpush.msrb.mxu3 %v3976_v10  ;;  %v4228_v9 = vand.u32 4294901760, %v2380_v50  ;;  %v2379_v18 = vld [vmem:[%s5005_s10 + $0x48] sm:$0xff] }
 0x240   : > { %v4080_v15 = vand.u32 4294901760, %v1630_v38  ;;  %v4082_v27 = vand.u32 4294901760, %v1673_v20  ;;  %2281 = vmatpush.msrb.mxu0 %v2098_v8  ;;  %2157 = vmatpush.msrb.mxu2 %v3955_v58 }
 0x241   : > { %2324 = vmatpush.msrb.mxu1 %v3920_v32  ;;  %v1580_v35 = vadd.f32 %v1579_v17, %v1535_v26  ;;  %2220 = vmatpush.msrb.mxu3 %v3992_v22  ;;  %v1477_v32 = vpop.f32.mrf.mxu3  ;;  %v4243_v20 = vsub.f32 %v2380_v50, %v4228_v9 }
 0x242   : > { %1675 = vmatmul.f32.gmra.mxu2 %v4082_v27  ;;  %1768 = vmatmul.f32.gmra.mxu3 %v4080_v15  ;;  %v4092_v44 = vsub.f32 %v1630_v38, %v4080_v15  ;;  %v1478_v58 = vadd.f32 %v1477_v32, %v1423_v28  ;;  %v4245_v38 = vand.u32 4294901760, %v2379_v18 }
 0x243   : > { %vm1589_vm15 = vcmp.ge.f32.partialorder %v1580_v35, 0.0  ;;  %2326 = vmatpush.msrb.mxu1 %v3930_v25  ;;  %2160 = vmatpush.msrb.mxu2 %v3969_v5  ;;  %v4258_v35 = vand.u32 4294901760, %v2378_v19 }
 0x244   : > { %v1594_v14 = vsel %vm1589_vm15, 1.0, %v5009_v52  ;;  %1824 = vmatmul.f32.gmra.mxu0 %v4092_v44  ;;  %v4099_v8 = vand.u32 4294901760, %v4092_v44  ;;  %2222 = vmatpush.msrb.mxu3 %v4010_v16  ;;  %v4256_v28 = vsub.f32 %v2379_v18, %v4245_v38 }
 0x245   : > { %v1599_v36 = vadd.f32 %v1594_v14, %v3647_v34  ;;  %2328 = vmatpush.msrb.mxu1 %v3937_v43  ;;  %2285 = vmatpush.msrb.mxu0 %v2104_v29  ;;  %v1583_v34 = vpop.f32.mrf.mxu1  ;;  %v2377_v14 = vld [vmem:[%s5005_s10 + $0x38] sm:$0xff] }
 0x246   : > { %v1538_v25 = vpop.f32.mrf.mxu0  ;;  %1877 = vmatmul.f32.gmra.mxu1 %v4099_v8  ;;  %v1681_v37 = vsub.f32 %v4092_v44, %v4099_v8  ;;  %2163 = vmatpush.msrb.mxu2 %v3985_v12 }
 0x247   : > { %v1633_v39 = vsel %vm811_vm1, %v1599_v36, 0  ;;  %v1539_v40 = vadd.f32 %v1538_v25, %v1478_v58  ;;  %2330 = vmatpush.msrb.mxu1 %v3950_v54  ;;  %2289 = vmatpush.msrb.mxu0 %v2110_v41  ;;  %v2496_v58 = vand.u32 4294901760, %v4256_v28  ;;  %v4276_v36 = vsub.f32 %v2378_v19, %v4258_v35 }
 0x248   : > { %v4114_v43 = vand.u32 4294901760, %v1633_v39  ;;  %v1682_v5 = vand.u32 4294901760, %v1681_v37  ;;  %2166 = vmatpush.msrb.mxu2 %v3995_v23  ;;  %v4278_v25 = vand.u32 4294901760, %v2377_v14 }
 0x249   : > { %v1584_v29 = vadd.f32 %v1583_v34, %v1539_v40  ;;  %2332 = vmatpush.msrb.mxu1 %v3965_v0  ;;  %2293 = vmatpush.msrb.mxu0 %v2116_v62  ;;  %v4202_v62 = vand.u32 4294901760, %v2382_v57  ;;  %v2376_v40 = vld [vmem:[%s5005_s10 + $0x30] sm:$0xff] }
 0x24a   : > { %1683 = vmatmul.f32.gmra.mxu2 %v1682_v5  ;;  %1772 = vmatmul.f32.gmra.mxu3 %v4114_v43  ;;  %v1687_v54 = vsub.f32 %v1633_v39, %v4114_v43 }
 0x24b   : > { %vm1590_vm0 = vcmp.ge.f32.partialorder %v1584_v29, 0.0  ;;  %2334 = vmatpush.msrb.mxu1 %v3976_v10  ;;  %2169 = vmatpush.msrb.mxu2 %v4013_v31  ;;  %v4215_v53 = vsub.f32 %v2382_v57, %v4202_v62  ;;  %v4293_v29 = vsub.f32 %v2377_v14, %v4278_v25  ;;  %v2373_v57 = vld [vmem:[%s5005_s10 + $0x18] sm:$0xff] }
 0x24c   : > { %v1595_v30 = vsel %vm1590_vm0, 1.0, %v5009_v52  ;;  %1829 = vmatmul.f32.gmra.mxu0 %v1687_v54  ;;  %v1688_v12 = vand.u32 4294901760, %v1687_v54 }
 0x24d   : > { %v1600_v41 = vadd.f32 %v1595_v30, %v3654_v46  ;;  %2336 = vmatpush.msrb.mxu1 %v3992_v22  ;;  %2172 = vmatpush.msrb.mxu2 %v4031_v45  ;;  %v2478_v7 = vand.u32 4294901760, %v4215_v53  ;;  %v4299_v30 = vand.u32 4294901760, %v2376_v40 }
 0x24e   : > { %1883 = vmatmul.f32.gmra.mxu1 %v1688_v12  ;;  %v1689_v0 = vsub.f32 %v1687_v54, %v1688_v12 }
 0x24f   : > { %v1636_v47 = vsel %vm811_vm1, %v1600_v41, 0  ;;  %2338 = vmatpush.msrb.mxu1 %v4010_v16  ;;  %v2384_v16 = vld [vmem:[%s5005_s10 + $0x70] sm:$0xff]  ;;  %v2479_v3 = vsub.f32 %v4215_v53, %v2478_v7 }
 0x250   : > { %v1694_v10 = vand.u32 4294901760, %v1636_v47  ;;  %v1690_v23 = vand.u32 4294901760, %v1689_v0  ;;  %v4176_v45 = vand.u32 4294901760, %v2384_v16 }
 0x252   : > { %1691 = vmatmul.f32.gmra.mxu2 %v1690_v23  ;;  %1776 = vmatmul.f32.gmra.mxu3 %v1694_v10  ;;  %v4131_v48 = vsub.f32 %v1636_v47, %v1694_v10  ;;  %v4184_v55 = vsub.f32 %v2384_v16, %v4176_v45  ;;  %v2508_v47 = vand.u32 4294901760, %v4293_v29 }
 0x254   : > { %1834 = vmatmul.f32.gmra.mxu0 %v4131_v48  ;;  %v1696_v46 = vand.u32 4294901760, %v4131_v48 }
 0x256   : > { %1889 = vmatmul.f32.gmra.mxu1 %v1696_v46  ;;  %v1697_v22 = vsub.f32 %v4131_v48, %v1696_v46 }
 0x258   : > { %v1698_v31 = vand.u32 4294901760, %v1697_v22  ;;  %v2509_v22 = vsub.f32 %v4293_v29, %v2508_v47 }
 0x25a   : > { %1699 = vmatmul.f32.gmra.mxu2 %v1698_v31  ;;  %1979 = vmatmul.f32.vlgmr.msra.gmra.mxu3 %v3978_v11 }
 0x25c   : > { %2028 = vmatmul.f32.vlgmr.msra.gmra.mxu0 %v4046_v51  ;;  %v4199_v51 = vsub.f32 %v2383_v4, %v4187_v56 }
 0x25e   : > { %2121 = vmatmul.f32.vlgmr.msra.gmra.mxu1 %v3978_v11  ;;  %v2472_v2 = vand.u32 4294901760, %v4199_v51 }
 0x262   : > { %1934 = vmatmul.f32.vlgmr.msra.gmra.mxu2 %v3978_v11  ;;  %1983 = vmatmul.f32.gmra.mxu3 %v4044_v61 }
 0x264   : > { %2036 = vmatmul.f32.gmra.mxu0 %v4082_v27  ;;  %v2490_v27 = vand.u32 4294901760, %v4243_v20 }
 0x266   : > { %2125 = vmatmul.f32.gmra.mxu1 %v4044_v61 }
 0x26a   : > { %1938 = vmatmul.f32.gmra.mxu2 %v4044_v61  ;;  %1987 = vmatmul.f32.gmra.mxu3 %v4080_v15 }
 0x26c   : > { %2044 = vmatmul.f32.gmra.mxu0 %v1682_v5  ;;  %v2502_v5 = vand.u32 4294901760, %v4276_v36 }
 0x26e   : > { %2129 = vmatmul.f32.gmra.mxu1 %v4080_v15  ;;  %v2503_v0 = vsub.f32 %v4276_v36, %v2502_v5 }
 0x272   : > { %1942 = vmatmul.f32.gmra.mxu2 %v4080_v15  ;;  %1991 = vmatmul.f32.gmra.mxu3 %v4114_v43 }
 0x274   : > { %2052 = vmatmul.f32.gmra.mxu0 %v1690_v23  ;;  %v4313_v23 = vsub.f32 %v2376_v40, %v4299_v30 }
 0x276   : > { %2133 = vmatmul.f32.gmra.mxu1 %v4114_v43  ;;  %v2514_v16 = vand.u32 4294901760, %v4313_v23 }
 0x278   : > { %v2515_v50 = vsub.f32 %v4313_v23, %v2514_v16 }
 0x27a   : > { %1946 = vmatmul.f32.gmra.mxu2 %v4114_v43  ;;  %1995 = vmatmul.f32.gmra.mxu3 %v1694_v10 }
 0x27c   : > { %2060 = vmatmul.f32.gmra.mxu0 %v1698_v31 }
 0x27e   : > { %2137 = vmatmul.f32.gmra.mxu1 %v1694_v10 }
 0x282   : > { %1950 = vmatmul.f32.gmra.mxu2 %v1694_v10  ;;  %2226 = vmatmul.f32.vlgmr.msrb.gmra.mxu3 %v4019_v33 }
 0x284   : > { %2295 = vmatmul.f32.vlgmr.msrb.gmra.mxu0 %v3978_v11 }
 0x286   : > { %2340 = vmatmul.f32.vlgmr.msrb.gmra.mxu1 %v3978_v11  ;;  %v2385_v11 = vld [vmem:[%s5005_s10 + $0x78] sm:$0xff] }
 0x28a   : > { %2175 = vmatmul.f32.vlgmr.msrb.gmra.mxu2 %v3999_v24  ;;  %2232 = vmatmul.f32.gmra.mxu3 %v4067_v21  ;;  %v4167_v24 = vand.u32 4294901760, %v2385_v11  ;;  %v2473_v21 = vsub.f32 %v4199_v51, %v2472_v2 }
 0x28c   : > { %2299 = vmatmul.f32.gmra.mxu0 %v4044_v61  ;;  %2391 = vmatpush.msra.mxu2 %v4167_v24  ;;  %v4174_v33 = vsub.f32 %v2385_v11, %v4167_v24  ;;  %v2474_v17 = vand.u32 4294901760, %v2473_v21  ;;  %v2372_v21 = vld [vmem:[%s5005_s10 + $0x10] sm:$0xff] }
 0x28d   : > { %2640 = vmatpush.msra.mxu1 %v4167_v24 }
 0x28e   : > { %2344 = vmatmul.f32.gmra.mxu1 %v4044_v61  ;;  %v2460_v49 = vand.u32 4294901760, %v4174_v33  ;;  %2393 = vmatpush.msra.mxu2 %v4176_v45  ;;  %v2466_v61 = vand.u32 4294901760, %v4184_v55 }
 0x28f   : > { %2572 = vmatpush.msra.mxu0 %v4174_v33  ;;  %2642 = vmatpush.msra.mxu1 %v4176_v45 }
 0x290   : > { %v2461_v59 = vsub.f32 %v4174_v33, %v2460_v49  ;;  %2395 = vmatpush.msra.mxu2 %v4187_v56  ;;  %v2467_v1 = vsub.f32 %v4184_v55, %v2466_v61 }
 0x291   : > { %2575 = vmatpush.msra.mxu0 %v4184_v55  ;;  %2644 = vmatpush.msra.mxu1 %v4187_v56 }
 0x292   : > { %2180 = vmatmul.f32.gmra.mxu2 %v4057_v6  ;;  %2238 = vmatmul.f32.gmra.mxu3 %v4099_v8  ;;  %v2462_v63 = vand.u32 4294901760, %v2461_v59  ;;  %v4219_v6 = vand.u32 4294901760, %v2381_v42  ;;  %v2468_v13 = vand.u32 4294901760, %v2467_v1  ;;  %v2491_v8 = vsub.f32 %v4243_v20, %v2490_v27 }
 0x293   : > { %2578 = vmatpush.msra.mxu0 %v4199_v51  ;;  %2397 = vmatpush.msra.mxu2 %v4202_v62  ;;  %v2510_v59 = vand.u32 4294901760, %v2509_v22 }
 0x294   : > { %2303 = vmatmul.f32.gmra.mxu0 %v4080_v15  ;;  %2463 = vmatpush.msra.mxu3 %v2462_v63  ;;  %v4232_v60 = vsub.f32 %v2381_v42, %v4219_v6  ;;  %v2492_v34 = vand.u32 4294901760, %v2491_v8  ;;  %v4337_v63 = vand.u32 4294901760, %v2373_v57  ;;  %v2371_v8 = vld [vmem:[%s5005_s10 + $0x8] sm:$0xff] }
 0x295   : > { %2646 = vmatpush.msra.mxu1 %v4202_v62  ;;  %2581 = vmatpush.msra.mxu0 %v4215_v53 }
 0x296   : > { %2348 = vmatmul.f32.gmra.mxu1 %v4080_v15  ;;  %2399 = vmatpush.msra.mxu2 %v4219_v6  ;;  %v2484_v26 = vand.u32 4294901760, %v4232_v60  ;;  %v2480_v15 = vand.u32 4294901760, %v2479_v3  ;;  %v4359_v3 = vand.u32 4294901760, %v2372_v21 }
 0x297   : > { %2469 = vmatpush.msra.mxu3 %v2468_v13  ;;  %2648 = vmatpush.msra.mxu1 %v4219_v6 }
 0x298   : > { %2584 = vmatpush.msra.mxu0 %v4232_v60  ;;  %2401 = vmatpush.msra.mxu2 %v4228_v9  ;;  %v2485_v32 = vsub.f32 %v4232_v60, %v2484_v26 }
 0x299   : > { %2475 = vmatpush.msra.mxu3 %v2474_v17  ;;  %2650 = vmatpush.msra.mxu1 %v4228_v9  ;;  %v4357_v17 = vsub.f32 %v2373_v57, %v4337_v63 }
 0x29a   : > { %2185 = vmatmul.f32.gmra.mxu2 %v4092_v44  ;;  %2244 = vmatmul.f32.gmra.mxu3 %v1688_v12  ;;  %v2486_v39 = vand.u32 4294901760, %v2485_v32  ;;  %v2375_v12 = vld [vmem:[%s5005_s10 + $0x28] sm:$0xff]  ;;  %v2516_v32 = vand.u32 4294901760, %v2515_v50 }
 0x29b   : > { %2587 = vmatpush.msra.mxu0 %v4243_v20  ;;  %2403 = vmatpush.msra.mxu2 %v4245_v38  ;;  %v2532_v40 = vand.u32 4294901760, %v4357_v17 }
 0x29c   : > { %2307 = vmatmul.f32.gmra.mxu0 %v4114_v43  ;;  %2481 = vmatpush.msra.mxu3 %v2480_v15 }
 0x29d   : > { %2652 = vmatpush.msra.mxu1 %v4245_v38  ;;  %2590 = vmatpush.msra.mxu0 %v4256_v28 }
 0x29e   : > { %2352 = vmatmul.f32.gmra.mxu1 %v4114_v43  ;;  %2405 = vmatpush.msra.mxu2 %v4258_v35  ;;  %v2497_v43 = vsub.f32 %v4256_v28, %v2496_v58 }
 0x29f   : > { %2654 = vmatpush.msra.mxu1 %v4258_v35  ;;  %2487 = vmatpush.msra.mxu3 %v2486_v39 }
 0x2a0   : > { %2593 = vmatpush.msra.mxu0 %v4276_v36  ;;  %v2498_v41 = vand.u32 4294901760, %v2497_v43  ;;  %2407 = vmatpush.msra.mxu2 %v4278_v25 }
 0x2a1   : > { %2656 = vmatpush.msra.mxu1 %v4278_v25  ;;  %2493 = vmatpush.msra.mxu3 %v2492_v34  ;;  %v4374_v34 = vsub.f32 %v2372_v21, %v4359_v3 }
 0x2a2   : > { %2190 = vmatmul.f32.gmra.mxu2 %v1687_v54  ;;  %2250 = vmatmul.f32.gmra.mxu3 %v1696_v46  ;;  %v2504_v46 = vand.u32 4294901760, %v2503_v0  ;;  %v2533_v0 = vsub.f32 %v4357_v17, %v2532_v40 }
 0x2a3   : > { %2596 = vmatpush.msra.mxu0 %v4293_v29  ;;  %2409 = vmatpush.msra.mxu2 %v4299_v30 }
 0x2a4   : > { %2311 = vmatmul.f32.gmra.mxu0 %v1694_v10  ;;  %2658 = vmatpush.msra.mxu1 %v4299_v30  ;;  %v2534_v50 = vand.u32 4294901760, %v2533_v0 }
 0x2a5   : > { %2499 = vmatpush.msra.mxu3 %v2498_v41  ;;  %2599 = vmatpush.msra.mxu0 %v4313_v23  ;;  %v2370_v41 = vld [vmem:[%s5005_s10] sm:$0xff] }
 0x2a6   : > { %2356 = vmatmul.f32.gmra.mxu1 %v1694_v10  ;;  %v4309_v10 = vand.u32 4294901760, %v2375_v12 }
 0x2a7   : > { %2505 = vmatpush.msra.mxu3 %v2504_v46  ;;  %v4391_v46 = vand.u32 4294901760, %v2370_v41 }
 0x2a8   : > { %v4323_v31 = vsub.f32 %v2375_v12, %v4309_v10  ;;  %2411 = vmatpush.msra.mxu2 %v4309_v10  ;;  %2660 = vmatpush.msra.mxu1 %v4309_v10  ;;  %v4382_v12 = vand.u32 4294901760, %v2371_v8 }
 0x2a9   : > { %2511 = vmatpush.msra.mxu3 %v2510_v59 }
 0x2aa   : > { %2195 = vmatmul.f32.gmra.mxu2 %v4131_v48  ;;  %v2374_v48 = vld [vmem:[%s5005_s10 + $0x20] sm:$0xff]  ;;  %v2520_v42 = vand.u32 4294901760, %v4323_v31  ;;  %2602 = vmatpush.msra.mxu0 %v4323_v31  ;;  %v4398_v59 = vsub.f32 %v2371_v8, %v4382_v12 }
 0x2ab   : > { %v4331_v4 = vand.u32 4294901760, %v2374_v48  ;;  %2517 = vmatpush.msra.mxu3 %v2516_v32 }
 0x2ac   : > { %v2521_v18 = vsub.f32 %v4323_v31, %v2520_v42  ;;  %v5012_v8 = vand.u32 4294901760, %v4398_v59 }
 0x2ad   : > { %v4347_v13 = vsub.f32 %v2374_v48, %v4331_v4  ;;  %2662 = vmatpush.msra.mxu1 %v4331_v4  ;;  %2413 = vmatpush.msra.mxu2 %v4331_v4  ;;  %v5011_v48 = vand.u32 4294901760, %v4374_v34 }
 0x2ae   : > { %v2522_v39 = vand.u32 4294901760, %v2521_v18  ;;  %v4405_v18 = vsub.f32 %v2370_v41, %v4391_v46  ;;  %v2545_v52 = vsub.f32 %v4398_v59, %v5012_v8 }
 0x2af   : > { %v2526_v14 = vand.u32 4294901760, %v4347_v13  ;;  %2605 = vmatpush.msra.mxu0 %v4347_v13  ;;  %2664 = vmatpush.msra.mxu1 %v4337_v63  ;;  %v2539_v21 = vsub.f32 %v4374_v34, %v5011_v48 }
 0x2b0   : > { %2415 = vmatpush.msra.mxu2 %v4337_v63  ;;  %2523 = vmatpush.msra.mxu3 %v2522_v39 }
 0x2b1   : > { %v4261_v44 = vpop.f32.mrf.mxu0  ;;  %v2527_v43 = vsub.f32 %v4347_v13, %v2526_v14  ;;  %2608 = vmatpush.msra.mxu0 %v4357_v17  ;;  %2666 = vmatpush.msra.mxu1 %v4359_v3  ;;  %v2540_v39 = vand.u32 4294901760, %v2539_v21  ;;  %v2546_v21 = vand.u32 4294901760, %v2545_v52 }
 0x2b2   : > { %2417 = vmatpush.msra.mxu2 %v4359_v3 }
 0x2b3   : > { %v4281_v37 = vpop.f32.mrf.mxu1  ;;  %v2528_v57 = vand.u32 4294901760, %v2527_v43  ;;  %2611 = vmatpush.msra.mxu0 %v4374_v34  ;;  %2668 = vmatpush.msra.mxu1 %v4382_v12  ;;  %v2550_v43 = vand.u32 4294901760, %v4405_v18 }
 0x2b4   : > { %2419 = vmatpush.msra.mxu2 %v4382_v12 }
 0x2b5   : > { %v4296_v54 = vpop.f32.mrf.mxu3  ;;  %2529 = vmatpush.msra.mxu3 %v2528_v57  ;;  %2614 = vmatpush.msra.mxu0 %v4398_v59  ;;  %v2551_v57 = vsub.f32 %v4405_v18, %v2550_v43 }
 0x2b6   : > { %2670 = vmatpush.msra.mxu1 %v4391_v46  ;;  %2421 = vmatpush.msra.mxu2 %v4391_v46 }
 0x2b7   : > { %2535 = vmatpush.msra.mxu3 %v2534_v50  ;;  %2617 = vmatpush.msra.mxu0 %v4405_v18  ;;  %v2552_v48 = vand.u32 4294901760, %v2551_v57 }
 0x2b8   : > { %2700 = vmatpush.msrb.mxu2 %v2460_v49 }
 0x2b9   : > { %v4327_v11 = vpop.f32.mrf.mxu0  ;;  %2541 = vmatpush.msra.mxu3 %v2540_v39 }
 0x2ba   : > { %2704 = vmatpush.msrb.mxu2 %v2466_v61 }
 0x2bb   : > { %v4341_v1 = vpop.f32.mrf.mxu1  ;;  %2547 = vmatpush.msra.mxu3 %v2546_v21 }
 0x2bc   : > { %2708 = vmatpush.msrb.mxu2 %v2472_v2 }
 0x2bd   : > { %v4363_v19 = vpop.f32.mrf.mxu2  ;;  %v4365_v15 = vpop.f32.mrf.mxu3  ;;  %2553 = vmatpush.msra.mxu3 %v2552_v48 }
 0x2be   : > { %2712 = vmatpush.msrb.mxu2 %v2478_v7 }
 0x2bf   : > { %2778 = vmatpush.msrb.mxu3 %v4167_v24  ;;  %v1617_v24 = vld [vmem:[%s5004_s9] sm:$0x3] }
 0x2c0   : > { %2716 = vmatpush.msrb.mxu2 %v2484_v26  ;;  %v4456_v55 = vperm.slane %v1617_v24, 0  ;;  %v4463_v51 = vperm.slane %v1617_v24, 1 }
 0x2c1   : > { %v4395_v22 = vpop.f32.mrf.mxu0  ;;  %2780 = vmatpush.msrb.mxu3 %v4176_v45 }
 0x2c2   : > { %2720 = vmatpush.msrb.mxu2 %v2490_v27  ;;  %v5026_v27 = vand.u32 4294901760, %v4374_v34 }
 0x2c3   : > { %v4409_v32 = vpop.f32.mrf.mxu1  ;;  %2782 = vmatpush.msrb.mxu3 %v4187_v56 }
 0x2c4   : > { %2724 = vmatpush.msrb.mxu2 %v2496_v58  ;;  %v5027_v58 = vand.u32 4294901760, %v4398_v59 }
 0x2c5   : > { %v1676_v41 = vpop.f32.mrf.mxu2  ;;  %v4416_v0 = vpop.f32.mrf.mxu3  ;;  %2784 = vmatpush.msrb.mxu3 %v4202_v62  ;;  %v1669_v62 = vadd.f32 %v4363_v19, %v4456_v55 }
 0x2c6   : > { %2728 = vmatpush.msrb.mxu2 %v2502_v5 }
 0x2c7   : > { %2786 = vmatpush.msrb.mxu3 %v4219_v6  ;;  %v1762_v7 = vadd.f32 %v4296_v54, %v1669_v62 }
 0x2c8   : > { %2732 = vmatpush.msrb.mxu2 %v2508_v47 }
 0x2c9   : > { %v4429_v50 = vpop.f32.mrf.mxu0  ;;  %2788 = vmatpush.msrb.mxu3 %v4228_v9  ;;  %v1816_v26 = vadd.f32 %v4261_v44, %v1762_v7 }
 0x2ca   : > { %2736 = vmatpush.msrb.mxu2 %v2514_v16  ;;  %v5028_v16 = vmov 0.0  }
 0x2cb   : > { %v4433_v8 = vpop.f32.mrf.mxu1  ;;  %2790 = vmatpush.msrb.mxu3 %v4245_v38  ;;  %v1677_v38 = vadd.f32 %v1676_v41, %v4456_v55  ;;  %v1867_v44 = vadd.f32 %v4281_v37, %v1816_v26 }
 0x2cc   : > { %2740 = vmatpush.msrb.mxu2 %v2520_v42 }
 0x2cd   : > { %v1684_v33 = vpop.f32.mrf.mxu2  ;;  %v4438_v52 = vpop.f32.mrf.mxu3  ;;  %2792 = vmatpush.msrb.mxu3 %v4258_v35 }
 0x2ce   : > { %2744 = vmatpush.msrb.mxu2 %v2526_v14  ;;  %v1685_v47 = vadd.f32 %v1684_v33, %v4456_v55 }
 0x2cf   : > { %2794 = vmatpush.msrb.mxu3 %v4278_v25  ;;  %v1766_v25 = vadd.f32 %v4365_v15, %v1677_v38 }
 0x2d0   : > { %2748 = vmatpush.msrb.mxu2 %v2532_v40 }
 0x2d1   : > { %v4449_v49 = vpop.f32.mrf.mxu0  ;;  %2796 = vmatpush.msrb.mxu3 %v4299_v30  ;;  %v1821_v23 = vadd.f32 %v4327_v11, %v1766_v25  ;;  %v1770_v11 = vadd.f32 %v4416_v0, %v1685_v47 }
 0x2d2   : > { %2752 = vmatpush.msrb.mxu2 %v5026_v27 }
 0x2d3   : > { %v4454_v45 = vpop.f32.mrf.mxu1  ;;  %2798 = vmatpush.msrb.mxu3 %v4309_v10 }
 0x2d4   : > { %2756 = vmatpush.msrb.mxu2 %v5027_v58 }
 0x2d5   : > { %v1692_v56 = vpop.f32.mrf.mxu2  ;;  %v4461_v61 = vpop.f32.mrf.mxu3  ;;  %2800 = vmatpush.msrb.mxu3 %v4331_v4 }
 0x2d6   : > { %2760 = vmatpush.msrb.mxu2 %v2550_v43  ;;  %v1693_v34 = vadd.f32 %v1692_v56, %v4456_v55 }
 0x2d7   : > { %2802 = vmatpush.msrb.mxu3 %v4337_v63  ;;  %v3432_v63 = vmov 1.0  }
 0x2d8   : > { %v1774_v41 = vadd.f32 %v4438_v52, %v1693_v34 }
 0x2d9   : > { %v2029_v2 = vpop.f32.mrf.mxu0  ;;  %2804 = vmatpush.msrb.mxu3 %v4359_v3  ;;  %v1873_v3 = vadd.f32 %v4341_v1, %v1821_v23 }
 0x2da   : > { %v2030_v53 = vadd.f32 %v2029_v2, %v4463_v51  ;;  %v1831_v52 = vadd.f32 %v4429_v50, %v1774_v41 }
 0x2db   : > { %v2122_v6 = vpop.f32.mrf.mxu1  ;;  %2806 = vmatpush.msrb.mxu3 %v4382_v12 }
 0x2dc   : > { %v4478_v9 = vadd.f32 %v2122_v6, %v2030_v53  ;;  %v1885_v50 = vadd.f32 %v4433_v8, %v1831_v52 }
 0x2dd   : > { %v4483_v60 = vpop.f32.mrf.mxu2  ;;  %v1980_v20 = vpop.f32.mrf.mxu3  ;;  %2808 = vmatpush.msrb.mxu3 %v4391_v46  ;;  %v1826_v46 = vadd.f32 %v4395_v22, %v1770_v11 }
 0x2de   : > { %v1701_v62 = vadd.f32 %v4483_v60, %v4456_v55 }
 0x2df   : > { %v1879_v22 = vadd.f32 %v4409_v32, %v1826_v46 }
 0x2e0   : > { %v1778_v60 = vadd.f32 %v4461_v61, %v1701_v62 }
 0x2e1   : > { %v2037_v28 = vpop.f32.mrf.mxu0 }
 0x2e2   : > { %v2038_v35 = vadd.f32 %v2037_v28, %v4463_v51  ;;  %v1836_v25 = vadd.f32 %v4449_v49, %v1778_v60 }
 0x2e3   : > { %v2126_v36 = vpop.f32.mrf.mxu1 }
 0x2e4   : > { %v4498_v5 = vadd.f32 %v2126_v36, %v2038_v35 }
 0x2e5   : > { %v1935_v29 = vpop.f32.mrf.mxu2  ;;  %v1984_v54 = vpop.f32.mrf.mxu3 }
 0x2e6   : > { %v1936_v30 = vadd.f32 %v1935_v29, %v1867_v44  ;;  %v1891_v44 = vadd.f32 %v4454_v45, %v1836_v25 }
 0x2e8   : > { %v4506_v10 = vadd.f32 %v1980_v20, %v1936_v30 }
 0x2e9   : > { %v2045_v31 = vpop.f32.mrf.mxu0 }
 0x2ea   : > { %vm2360_vm1 = vcmp.ge.f32.partialorder %v4506_v10, 0.0  ;;  %v2046_v37 = vadd.f32 %v2045_v31, %v4463_v51 }
 0x2eb   : > { %v2365_v4 = vsel %vm2360_vm1, 1.0, %v5028_v16  ;;  %v2130_v42 = vpop.f32.mrf.mxu1  ;;  %3353 = vmatmul.msk.f32.vlgmr.msra.gmra.mxu3 %vm2360_vm1, %v3432_v63 }
 0x2ec   : > { %v2422_v13 = vsub.f32 %v2365_v4, %v2365_v4  ;;  %v4520_v17 = vadd.f32 %v2130_v42, %v2046_v37 }
 0x2ed   : > { %v1939_v19 = vpop.f32.mrf.mxu2  ;;  %v1988_v15 = vpop.f32.mrf.mxu3 }
 0x2ee   : > { %v2423_v14 = vand.u32 4294901760, %v2422_v13  ;;  %v1940_v40 = vadd.f32 %v1939_v19, %v1873_v3  ;;  %2619 = vmatmul.f32.vlgmr.msra.gmra.mxu0 %v2422_v13 }
 0x2f0   : > { %v2424_v12 = vsub.f32 %v2422_v13, %v2423_v14  ;;  %v4524_v48 = vadd.f32 %v1984_v54, %v1940_v40  ;;  %2673 = vmatmul.f32.vlgmr.msra.gmra.mxu1 %v2423_v14 }
 0x2f1   : > { %v2053_v59 = vpop.f32.mrf.mxu0 }
 0x2f2   : > { %vm2361_vm2 = vcmp.ge.f32.partialorder %v4524_v48, 0.0  ;;  %v2054_v18 = vadd.f32 %v2053_v59, %v4463_v51  ;;  %v2425_v39 = vand.u32 4294901760, %v2424_v12 }
 0x2f3   : > { %v2134_v1 = vpop.f32.mrf.mxu1  ;;  %3354 = vmatmul.msk.f32.gmra.mxu3 %vm2361_vm2, %v3432_v63  ;;  %v2366_v43 = vsel %vm2361_vm2, 1.0, %v5028_v16 }
 0x2f4   : > { %v4536_v0 = vadd.f32 %v2134_v1, %v2054_v18  ;;  %2426 = vmatmul.f32.vlgmr.msra.gmra.mxu2 %v2425_v39  ;;  %v2429_v57 = vsub.f32 %v2366_v43, %v2366_v43 }
 0x2f5   : > { %v1943_v21 = vpop.f32.mrf.mxu2  ;;  %v1992_v33 = vpop.f32.mrf.mxu3 }
 0x2f6   : > { %v1944_v24 = vadd.f32 %v1943_v21, %v1879_v22  ;;  %2623 = vmatmul.f32.gmra.mxu0 %v2429_v57  ;;  %v2430_v56 = vand.u32 4294901760, %v2429_v57 }
 0x2f8   : > { %v4541_v2 = vadd.f32 %v1988_v15, %v1944_v24  ;;  %2678 = vmatmul.f32.gmra.mxu1 %v2430_v56  ;;  %v2431_v53 = vsub.f32 %v2429_v57, %v2430_v56 }
 0x2f9   : > { %v2061_v6 = vpop.f32.mrf.mxu0 }
 0x2fa   : > { %vm2362_vm3 = vcmp.ge.f32.partialorder %v4541_v2, 0.0  ;;  %v2062_v32 = vadd.f32 %v2061_v6, %v4463_v51  ;;  %v2432_v7 = vand.u32 4294901760, %v2431_v53  ;;  %v2883_v6 = vld [vmem:[%s5007_s12 + $0x70] sm:$0xff] }
 0x2fb   : > { %v2138_v20 = vpop.f32.mrf.mxu1  ;;  %3355 = vmatmul.msk.f32.gmra.mxu3 %vm2362_vm3, %v3432_v63  ;;  %v2367_v55 = vsel %vm2362_vm3, 1.0, %v5028_v16 }
 0x2fc   : > { %v4553_v38 = vadd.f32 %v2138_v20, %v2062_v32  ;;  %2433 = vmatmul.f32.gmra.mxu2 %v2432_v7  ;;  %v2436_v26 = vsub.f32 %v2367_v55, %v2367_v55  ;;  %v4633_v7 = vand.u32 4294901760, %v2883_v6 }
 0x2fd   : > { %v1947_v27 = vpop.f32.mrf.mxu2  ;;  %v1996_v51 = vpop.f32.mrf.mxu3 }
 0x2fe   : > { %v1948_v28 = vadd.f32 %v1947_v27, %v1885_v50  ;;  %2627 = vmatmul.f32.gmra.mxu0 %v2436_v26  ;;  %v2437_v35 = vand.u32 4294901760, %v2436_v26  ;;  %v4642_v55 = vsub.f32 %v2883_v6, %v4633_v7 }
 0x300   : > { %v4556_v58 = vadd.f32 %v1992_v33, %v1948_v28  ;;  %2683 = vmatmul.f32.gmra.mxu1 %v2437_v35  ;;  %v2438_v36 = vsub.f32 %v2436_v26, %v2437_v35  ;;  %v2934_v26 = vand.u32 4294901760, %v4642_v55  ;;  %v2880_v35 = vld [vmem:[%s5007_s12 + $0x58] sm:$0xff] }
 0x301   : > { %v2296_v3 = vpop.f32.mrf.mxu0 }
 0x302   : > { %vm2363_vm4 = vcmp.ge.f32.partialorder %v4556_v58, 0.0  ;;  %v2439_v61 = vand.u32 4294901760, %v2438_v36  ;;  %v2935_v25 = vsub.f32 %v4642_v55, %v2934_v26 }
 0x303   : > { %3356 = vmatmul.msk.f32.gmra.mxu3 %vm2363_vm4, %v3432_v63  ;;  %v2368_v8 = vsel %vm2363_vm4, 1.0, %v5028_v16  ;;  %v2341_v14 = vpop.f32.mrf.mxu1 }
 0x304   : > { %2440 = vmatmul.f32.gmra.mxu2 %v2439_v61  ;;  %v2443_v29 = vsub.f32 %v2368_v8, %v2368_v8 }
 0x305   : > { %v1951_v54 = vpop.f32.mrf.mxu2  ;;  %v2227_v49 = vpop.f32.mrf.mxu3 }
 0x306   : > { %v1952_v30 = vadd.f32 %v1951_v54, %v1891_v44  ;;  %2631 = vmatmul.f32.gmra.mxu0 %v2443_v29  ;;  %v2444_v47 = vand.u32 4294901760, %v2443_v29  ;;  %v2879_v54 = vld [vmem:[%s5007_s12 + $0x50] sm:$0xff] }
 0x308   : > { %v1997_v23 = vadd.f32 %v1996_v51, %v1952_v30  ;;  %2688 = vmatmul.f32.gmra.mxu1 %v2444_v47  ;;  %v2445_v31 = vsub.f32 %v2443_v29, %v2444_v47  ;;  %v4682_v29 = vand.u32 4294901760, %v2880_v35  ;;  %v2936_v30 = vand.u32 4294901760, %v2935_v25  ;;  %v2873_v25 = vld [vmem:[%s5007_s12 + $0x20] sm:$0xff] }
 0x309   : > { %v2300_v39 = vpop.f32.mrf.mxu0 }
 0x30a   : > { %vm2364_vm5 = vcmp.ge.f32.partialorder %v1997_v23, 0.0  ;;  %v2446_v37 = vand.u32 4294901760, %v2445_v31  ;;  %v4696_v31 = vsub.f32 %v2880_v35, %v4682_v29 }
 0x30b   : > { %3357 = vmatmul.msk.f32.gmra.mxu3 %vm2364_vm5, %v3432_v63  ;;  %v2369_v4 = vsel %vm2364_vm5, 1.0, %v5028_v16  ;;  %v2345_v43 = vpop.f32.mrf.mxu1 }
 0x30c   : > { %2447 = vmatmul.f32.gmra.mxu2 %v2446_v37  ;;  %v2450_v42 = vsub.f32 %v2369_v4, %v2369_v4  ;;  %v4698_v37 = vand.u32 4294901760, %v2879_v54  ;;  %v2878_v4 = vld [vmem:[%s5007_s12 + $0x48] sm:$0xff] }
 0x30d   : > { %v2176_v45 = vpop.f32.mrf.mxu2  ;;  %v2233_v40 = vpop.f32.mrf.mxu3 }
 0x30e   : > { %v2177_v11 = vadd.f32 %v2176_v45, %v4478_v9  ;;  %2635 = vmatmul.f32.gmra.mxu0 %v2450_v42  ;;  %v2451_v13 = vand.u32 4294901760, %v2450_v42 }
 0x310   : > { %v2228_v19 = vadd.f32 %v2227_v49, %v2177_v11  ;;  %2693 = vmatmul.f32.gmra.mxu1 %v2451_v13  ;;  %v2452_v15 = vsub.f32 %v2450_v42, %v2451_v13  ;;  %v4708_v11 = vand.u32 4294901760, %v2878_v4  ;;  %v5021_v13 = vand.u32 4294901760, %v4696_v31 }
 0x311   : > { %v4663_v28 = vpop.f32.mrf.mxu0 }
 0x312   : > { %v2297_v34 = vadd.f32 %v2296_v3, %v2228_v19  ;;  %v2453_v12 = vand.u32 4294901760, %v2452_v15  ;;  %v4712_v3 = vsub.f32 %v2879_v54, %v4698_v37  ;;  %v2877_v19 = vld [vmem:[%s5007_s12 + $0x40] sm:$0xff] }
 0x313   : > { %3363 = vmatmul.msk.f32.vlgmr.msrb.gmra.mxu3 %vm2360_vm1, %v3432_v63  ;;  %v4693_v23 = vpop.f32.mrf.mxu1 }
 0x314   : > { %v4575_v46 = vadd.f32 %v2341_v14, %v2297_v34  ;;  %2454 = vmatmul.f32.gmra.mxu2 %v2453_v12  ;;  %v4720_v14 = vsub.f32 %v2878_v4, %v4708_v11  ;;  %v2953_v34 = vsub.f32 %v4696_v31, %v5021_v13  ;;  %v5020_v12 = vand.u32 4294901760, %v4712_v3 }
 0x315   : > { %v2181_v59 = vpop.f32.mrf.mxu2  ;;  %v2239_v41 = vpop.f32.mrf.mxu3 }
 0x316   : > { %v2182_v9 = vadd.f32 %v2181_v59, %v4498_v5  ;;  %v2876_v59 = vld [vmem:[%s5007_s12 + $0x38] sm:$0xff] }
 0x318   : > { %v2234_v18 = vadd.f32 %v2233_v40, %v2182_v9  ;;  %v4722_v40 = vand.u32 4294901760, %v2877_v19 }
 0x31a   : > { %v2301_v1 = vadd.f32 %v2300_v39, %v2234_v18  ;;  %v5018_v18 = vand.u32 4294901760, %v4720_v14  ;;  %v4738_v39 = vsub.f32 %v2877_v19, %v4722_v40 }
 0x31b   : > { %3364 = vmatmul.msk.f32.gmra.mxu3 %vm2361_vm2, %v3432_v63 }
 0x31c   : > { %v4581_v22 = vadd.f32 %v2345_v43, %v2301_v1  ;;  %3358 = vmatmul.msk.f32.vlgmr.msrb.gmra.mxu2 %vm2360_vm1, %v3432_v63  ;;  %v4740_v1 = vand.u32 4294901760, %v2876_v59  ;;  %v4743_v43 = vpop.f32.mrf.mxu0 }
 0x31d   : > { %v2186_v57 = vpop.f32.mrf.mxu2  ;;  %v2245_v10 = vpop.f32.mrf.mxu3 }
 0x31e   : > { %v2187_v21 = vadd.f32 %v2186_v57, %v4520_v17  ;;  %v2954_v57 = vand.u32 4294901760, %v2953_v34 }
 0x320   : > { %v4593_v5 = vadd.f32 %v2239_v41, %v2187_v21  ;;  %v2959_v21 = vsub.f32 %v4712_v3, %v5020_v12 }
 0x323   : > { %3365 = vmatmul.msk.f32.gmra.mxu3 %vm2362_vm3, %v3432_v63 }
 0x324   : > { %3359 = vmatmul.msk.f32.gmra.mxu2 %vm2361_vm2, %v3432_v63 }
 0x325   : > { %v2191_v33 = vpop.f32.mrf.mxu2  ;;  %v2251_v53 = vpop.f32.mrf.mxu3 }
 0x326   : > { %v2192_v24 = vadd.f32 %v2191_v33, %v4536_v0  ;;  %v2884_v0 = vld [vmem:[%s5007_s12 + $0x78] sm:$0xff]  ;;  %v2965_v33 = vsub.f32 %v4720_v14, %v5018_v18 }
 0x327   : > { %v4625_v52 = vand.u32 4294901760, %v2884_v0 }
 0x328   : > { %v4602_v17 = vadd.f32 %v2245_v10, %v2192_v24  ;;  %v2875_v10 = vld [vmem:[%s5007_s12 + $0x30] sm:$0xff]  ;;  %v5017_v24 = vand.u32 4294901760, %v4738_v39  ;;  %v2966_v6 = vand.u32 4294901760, %v2965_v33 }
 0x329   : > { %v4631_v32 = vsub.f32 %v2884_v0, %v4625_v52  ;;  %2886 = vmatpush.msrb.mxu0 %v4625_v52  ;;  %3082 = vmatpush.msra.mxu3 %v4625_v52  ;;  %v2874_v0 = vld [vmem:[%s5007_s12 + $0x28] sm:$0xff]  ;;  %v2871_v33 = vld [vmem:[%s5007_s12 + $0x10] sm:$0xff] }
 0x32b   : > { %3366 = vmatmul.msk.f32.gmra.mxu3 %vm2363_vm4, %v3432_v63  ;;  %v2928_v20 = vand.u32 4294901760, %v4631_v32  ;;  %2888 = vmatpush.msrb.mxu0 %v4633_v7 }
 0x32c   : > { %3360 = vmatmul.msk.f32.gmra.mxu2 %vm2362_vm3, %v3432_v63  ;;  %3084 = vmatpush.msra.mxu3 %v4633_v7 }
 0x32d   : > { %v2196_v56 = vpop.f32.mrf.mxu2  ;;  %3029 = vmatpush.msra.mxu2 %v4631_v32  ;;  %v2929_v50 = vsub.f32 %v4631_v32, %v2928_v20 }
 0x32e   : > { %v2197_v62 = vadd.f32 %v2196_v56, %v4553_v38  ;;  %v2881_v38 = vld [vmem:[%s5007_s12 + $0x60] sm:$0xff]  ;;  %v4760_v56 = vsub.f32 %v2876_v59, %v4740_v1 }
 0x32f   : > { %v4659_v51 = vand.u32 4294901760, %v2881_v38  ;;  %3032 = vmatpush.msra.mxu2 %v4642_v55  ;;  %v2930_v36 = vand.u32 4294901760, %v2929_v50  ;;  %v4775_v50 = vpop.f32.mrf.mxu1 }
 0x330   : > { %v4611_v48 = vadd.f32 %v2251_v53, %v2197_v62  ;;  %v2960_v62 = vand.u32 4294901760, %v2959_v21  ;;  %v4763_v53 = vand.u32 4294901760, %v2875_v10 }
 0x331   : > { %v4676_v8 = vsub.f32 %v2881_v38, %v4659_v51  ;;  %2931 = vmatpush.msrb.mxu1 %v2930_v36  ;;  %v5014_v38 = vand.u32 4294901760, %v4760_v56  ;;  %v4780_v36 = vand.u32 4294901760, %v2874_v0 }
 0x332   : > { %v4778_v35 = vsub.f32 %v2875_v10, %v4763_v53 }
 0x333   : > { %3367 = vmatmul.msk.f32.gmra.mxu3 %vm2364_vm5, %v3432_v63  ;;  %v5022_v49 = vand.u32 4294901760, %v4676_v8  ;;  %2937 = vmatpush.msrb.mxu1 %v2936_v30  ;;  %v2977_v30 = vsub.f32 %v4760_v56, %v5014_v38 }
 0x334   : > { %3361 = vmatmul.msk.f32.gmra.mxu2 %vm2363_vm4, %v3432_v63  ;;  %v5013_v4 = vand.u32 4294901760, %v4778_v35 }
 0x335   : > { %v2947_v45 = vsub.f32 %v4676_v8, %v5022_v49 }
 0x336   : > { %v2983_v21 = vsub.f32 %v4778_v35, %v5013_v4 }
 0x337   : > { %v2948_v15 = vand.u32 4294901760, %v2947_v45  ;;  %v2872_v45 = vld [vmem:[%s5007_s12 + $0x18] sm:$0xff] }
 0x338   : > { %v4806_v59 = vand.u32 4294901760, %v2872_v45 }
 0x33c   : > { %3362 = vmatmul.msk.f32.gmra.mxu2 %vm2364_vm5, %v3432_v63  ;;  %v2882_v63 = vld [vmem:[%s5007_s12 + $0x68] sm:$0xff] }
 0x33d   : > { %v4644_v60 = vand.u32 4294901760, %v2882_v63 }
 0x33f   : > { %v4657_v27 = vsub.f32 %v2882_v63, %v4644_v60  ;;  %2890 = vmatpush.msrb.mxu0 %v4644_v60  ;;  %3086 = vmatpush.msra.mxu3 %v4644_v60  ;;  %v2971_v63 = vsub.f32 %v4738_v39, %v5017_v24 }
 0x341   : > { %v5024_v61 = vand.u32 4294901760, %v4657_v27  ;;  %2892 = vmatpush.msrb.mxu0 %v4659_v51  ;;  %3035 = vmatpush.msra.mxu2 %v4657_v27  ;;  %v2972_v54 = vand.u32 4294901760, %v2971_v63  ;;  %v4828_v63 = vpop.f32.mrf.mxu0 }
 0x342   : > { %3088 = vmatpush.msra.mxu3 %v4659_v51 }
 0x343   : > { %v2941_v47 = vsub.f32 %v4657_v27, %v5024_v61  ;;  %3038 = vmatpush.msra.mxu2 %v4676_v8  ;;  %2894 = vmatpush.msrb.mxu0 %v4682_v29 }
 0x344   : > { %3090 = vmatpush.msra.mxu3 %v4682_v29 }
 0x345   : > { %v2942_v42 = vand.u32 4294901760, %v2941_v47  ;;  %2896 = vmatpush.msrb.mxu0 %v4698_v37  ;;  %3041 = vmatpush.msra.mxu2 %v4696_v31  ;;  %v4789_v47 = vand.u32 4294901760, %v2873_v25 }
 0x346   : > { %3092 = vmatpush.msra.mxu3 %v4698_v37 }
 0x347   : > { %2943 = vmatpush.msrb.mxu1 %v2942_v42  ;;  %2898 = vmatpush.msrb.mxu0 %v4708_v11  ;;  %v4795_v42 = vsub.f32 %v2874_v0, %v4780_v36  ;;  %v4804_v34 = vsub.f32 %v2873_v25, %v4789_v47  ;;  %v4822_v0 = vsub.f32 %v2872_v45, %v4806_v59  ;;  %v2984_v25 = vand.u32 4294901760, %v2983_v21 }
 0x348   : > { %3044 = vmatpush.msra.mxu2 %v4712_v3  ;;  %3094 = vmatpush.msra.mxu3 %v4708_v11 }
 0x349   : > { %2949 = vmatpush.msrb.mxu1 %v2948_v15  ;;  %2900 = vmatpush.msrb.mxu0 %v4722_v40  ;;  %v2978_v15 = vand.u32 4294901760, %v2977_v30  ;;  %v5015_v10 = vand.u32 4294901760, %v4795_v42  ;;  %v2870_v30 = vld [vmem:[%s5007_s12 + $0x8] sm:$0xff]  ;;  %v5019_v4 = vand.u32 4294901760, %v4822_v0 }
 0x34a   : > { %3047 = vmatpush.msra.mxu2 %v4720_v14  ;;  %3096 = vmatpush.msra.mxu3 %v4722_v40  ;;  %v4846_v21 = vand.u32 4294901760, %v2870_v30 }
 0x34b   : > { %2955 = vmatpush.msrb.mxu1 %v2954_v57  ;;  %2902 = vmatpush.msrb.mxu0 %v4740_v1 }
 0x34c   : > { %3050 = vmatpush.msra.mxu2 %v4738_v39  ;;  %3098 = vmatpush.msra.mxu3 %v4740_v1 }
 0x34d   : > { %2961 = vmatpush.msrb.mxu1 %v2960_v62  ;;  %2904 = vmatpush.msrb.mxu0 %v4763_v53  ;;  %v5016_v62 = vand.u32 4294901760, %v4804_v34 }
 0x34e   : > { %3053 = vmatpush.msra.mxu2 %v4760_v56  ;;  %3100 = vmatpush.msra.mxu3 %v4763_v53 }
 0x34f   : > { %2967 = vmatpush.msrb.mxu1 %v2966_v6  ;;  %2906 = vmatpush.msrb.mxu0 %v4780_v36  ;;  %v4824_v6 = vand.u32 4294901760, %v2871_v33  ;;  %v2995_v45 = vsub.f32 %v4804_v34, %v5016_v62 }
 0x350   : > { %3056 = vmatpush.msra.mxu2 %v4778_v35  ;;  %3102 = vmatpush.msra.mxu3 %v4780_v36 }
 0x351   : > { %2973 = vmatpush.msrb.mxu1 %v2972_v54  ;;  %2908 = vmatpush.msrb.mxu0 %v4789_v47  ;;  %v2989_v54 = vsub.f32 %v4795_v42, %v5015_v10  ;;  %v4842_v38 = vsub.f32 %v2871_v33, %v4824_v6  ;;  %v2869_v10 = vld [vmem:[%s5007_s12] sm:$0xff]  ;;  %v2996_v62 = vand.u32 4294901760, %v2995_v45  ;;  %v3001_v33 = vsub.f32 %v4822_v0, %v5019_v4 }
 0x352   : > { %3059 = vmatpush.msra.mxu2 %v4795_v42  ;;  %3104 = vmatpush.msra.mxu3 %v4789_v47  ;;  %v4863_v18 = vand.u32 4294901760, %v2869_v10  ;;  %v4869_v45 = vld [vmem:[%s5006_s11] ss:$0 sm:$0xff] }
 0x353   : > { %2979 = vmatpush.msrb.mxu1 %v2978_v15  ;;  %2910 = vmatpush.msrb.mxu0 %v4806_v59  ;;  %v2990_v15 = vand.u32 4294901760, %v2989_v54  ;;  %v5023_v24 = vand.u32 4294901760, %v4842_v38  ;;  %v4861_v54 = vsub.f32 %v2870_v30, %v4846_v21  ;;  %v3002_v4 = vand.u32 4294901760, %v3001_v33 }
 0x354   : > { %3062 = vmatpush.msra.mxu2 %v4804_v34  ;;  %3106 = vmatpush.msra.mxu3 %v4806_v59  ;;  %v4882_v49 = vsub.f32 %v2869_v10, %v4863_v18 }
 0x355   : > { %2985 = vmatpush.msrb.mxu1 %v2984_v25  ;;  %2912 = vmatpush.msrb.mxu0 %v4824_v6  ;;  %v4858_v25 = vpop.f32.mrf.mxu1  ;;  %v3007_v12 = vsub.f32 %v4842_v38, %v5023_v24  ;;  %v5025_v13 = vand.u32 4294901760, %v4861_v54 }
 0x356   : > { %3065 = vmatpush.msra.mxu2 %v4822_v0  ;;  %3108 = vmatpush.msra.mxu3 %v4824_v6  ;;  %5029 = vst [vmem:[#allocation2_spill] sm:$0xff] %v4858_v25 }
 0x357   : > { %2991 = vmatpush.msrb.mxu1 %v2990_v15  ;;  %2914 = vmatpush.msrb.mxu0 %v4846_v21  ;;  %v3008_v33 = vand.u32 4294901760, %v3007_v12  ;;  %v3013_v61 = vsub.f32 %v4861_v54, %v5025_v13  ;;  %v5030_v12 = vand.u32 4294901760, %v4657_v27 }
 0x358   : > { %3068 = vmatpush.msra.mxu2 %v4842_v38  ;;  %3110 = vmatpush.msra.mxu3 %v4846_v21 }
 0x359   : > { %2997 = vmatpush.msrb.mxu1 %v2996_v62  ;;  %2916 = vmatpush.msrb.mxu0 %v4863_v18  ;;  %v3018_v62 = vand.u32 4294901760, %v4882_v49  ;;  %v3014_v32 = vand.u32 4294901760, %v3013_v61 }
 0x35a   : > { %3071 = vmatpush.msra.mxu2 %v4861_v54  ;;  %3112 = vmatpush.msra.mxu3 %v4863_v18 }
 0x35b   : > { %3123 = vmatpush.msra.mxu0 %v2928_v20  ;;  %3003 = vmatpush.msrb.mxu1 %v3002_v4  ;;  %v3019_v20 = vsub.f32 %v4882_v49, %v3018_v62 }
 0x35c   : > { %3074 = vmatpush.msra.mxu2 %v4882_v49 }
 0x35d   : > { %3127 = vmatpush.msra.mxu0 %v2934_v26  ;;  %3009 = vmatpush.msrb.mxu1 %v3008_v33  ;;  %v3020_v13 = vand.u32 4294901760, %v3019_v20  ;;  %v5032_v26 = vand.u32 4294901760, %v4696_v31 }
 0x35f   : > { %3131 = vmatpush.msra.mxu0 %v5030_v12  ;;  %3015 = vmatpush.msrb.mxu1 %v3014_v32 }
 0x361   : > { %3021 = vmatpush.msrb.mxu1 %v3020_v13  ;;  %v5034_v13 = vand.u32 4294901760, %v4720_v14 }
 0x363   : > { %3190 = vmatpush.msra.mxu1 %v4625_v52 }
 0x365   : > { %3192 = vmatpush.msra.mxu1 %v4633_v7 }
 0x367   : > { %3194 = vmatpush.msra.mxu1 %v4644_v60 }
 0x369   : > { %3196 = vmatpush.msra.mxu1 %v4659_v51  ;;  %v5037_v51 = vand.u32 4294901760, %v4778_v35 }
 0x36b   : > { %v2620_v24 = vpop.f32.mrf.mxu0  ;;  %3198 = vmatpush.msra.mxu1 %v4682_v29 }
 0x36d   : > { %v2674_v4 = vpop.f32.mrf.mxu1  ;;  %3200 = vmatpush.msra.mxu1 %v4698_v37 }
 0x36e   : > { %v4623_v2 = vpop.f32.mrf.mxu3 }
 0x36f   : > { %3202 = vmatpush.msra.mxu1 %v4708_v11  ;;  %v5040_v11 = vand.u32 4294901760, %v4822_v0  ;;  %v5042_v0 = vand.u32 4294901760, %v4861_v54 }
 0x371   : > { %3204 = vmatpush.msra.mxu1 %v4722_v40  ;;  %v5041_v40 = vand.u32 4294901760, %v4842_v38 }
 0x373   : > { %3206 = vmatpush.msra.mxu1 %v4740_v1  ;;  %v3403_v1 = vld [vmem:[%s4591_s17 + $0x1] ss:$0 sm:$0xff] }
 0x375   : > { %3208 = vmatpush.msra.mxu1 %v4763_v53 }
 0x376   : > { %v4669_v58 = vpop.f32.mrf.mxu3 }
 0x377   : > { %v4680_v44 = vpop.f32.mrf.mxu2  ;;  %3210 = vmatpush.msra.mxu1 %v4780_v36  ;;  %v2305_v36 = vadd.f32 %v4663_v28, %v4593_v5 }
 0x378   : > { %v2428_v10 = vadd.f32 %v4869_v45, %v4680_v44  ;;  %v5031_v44 = vand.u32 4294901760, %v4676_v8  ;;  %v2624_v8 = vpop.f32.mrf.mxu0 }
 0x379   : > { %3212 = vmatpush.msra.mxu1 %v4789_v47 }
 0x37a   : > { %v2556_v25 = vadd.f32 %v4623_v2, %v2428_v10  ;;  %3135 = vmatpush.msra.mxu0 %v5031_v44  ;;  %v5033_v2 = vand.u32 4294901760, %v4712_v3  ;;  %v5035_v10 = vand.u32 4294901760, %v4738_v39  ;;  %v5036_v3 = vand.u32 4294901760, %v4760_v56  ;;  %v3402_v44 = vld [vmem:[%s4591_s17] ss:$0 sm:$0xff] }
 0x37b   : > { %v5038_v39 = vand.u32 4294901760, %v4795_v42  ;;  %3214 = vmatpush.msra.mxu1 %v4806_v59 }
 0x37c   : > { %3139 = vmatpush.msra.mxu0 %v5032_v26  ;;  %v2621_v33 = vadd.f32 %v2620_v24, %v2556_v25 }
 0x37d   : > { %3216 = vmatpush.msra.mxu1 %v4824_v6  ;;  %v2309_v6 = vadd.f32 %v4743_v43, %v4602_v17  ;;  %v2313_v17 = vadd.f32 %v4828_v63, %v4611_v48 }
 0x37e   : > { %v4734_v9 = vpop.f32.mrf.mxu3  ;;  %3143 = vmatpush.msra.mxu0 %v5033_v2  ;;  %v2675_v31 = vadd.f32 %v2674_v4, %v2621_v33 }
 0x37f   : > { %v4745_v41 = vpop.f32.mrf.mxu2  ;;  %3218 = vmatpush.msra.mxu1 %v4846_v21 }
 0x380   : > { %v2435_v27 = vadd.f32 %v4869_v45, %v4745_v41  ;;  %3147 = vmatpush.msra.mxu0 %v5034_v13  ;;  %v2679_v41 = vpop.f32.mrf.mxu1  ;;  %v2628_v29 = vpop.f32.mrf.mxu0  ;;  %v3404_v13 = vld [vmem:[%s4591_s17 + $0x2] ss:$0 sm:$0xff] }
 0x381   : > { %3220 = vmatpush.msra.mxu1 %v4863_v18 }
 0x382   : > { %v2559_v52 = vadd.f32 %v4669_v58, %v2435_v27  ;;  %3151 = vmatpush.msra.mxu0 %v5035_v10 }
 0x384   : > { %3155 = vmatpush.msra.mxu0 %v5036_v3  ;;  %v2625_v25 = vadd.f32 %v2624_v8, %v2559_v52 }
 0x386   : > { %v4801_v19 = vpop.f32.mrf.mxu3  ;;  %3159 = vmatpush.msra.mxu0 %v5037_v51  ;;  %v2680_v32 = vadd.f32 %v2679_v41, %v2625_v25 }
 0x387   : > { %v4810_v57 = vpop.f32.mrf.mxu2 }
 0x388   : > { %v2442_v60 = vadd.f32 %v4869_v45, %v4810_v57  ;;  %3163 = vmatpush.msra.mxu0 %v5038_v39  ;;  %v5039_v57 = vand.u32 4294901760, %v4804_v34  ;;  %v2684_v42 = vpop.f32.mrf.mxu1 }
 0x38a   : > { %v2562_v56 = vadd.f32 %v4734_v9, %v2442_v60  ;;  %3167 = vmatpush.msra.mxu0 %v5039_v57 }
 0x38c   : > { %3171 = vmatpush.msra.mxu0 %v5040_v11  ;;  %v2629_v4 = vadd.f32 %v2628_v29, %v2562_v56  ;;  %v5043_v56 = vld [vmem:[#allocation2_spill] sm:$0xff] }
 0x38e   : > { %v4876_v30 = vpop.f32.mrf.mxu3  ;;  %3175 = vmatpush.msra.mxu0 %v5041_v40  ;;  %v2685_v27 = vadd.f32 %v2684_v42, %v2629_v4 }
 0x38f   : > { %v4878_v15 = vpop.f32.mrf.mxu2 }
 0x390   : > { %v2449_v9 = vadd.f32 %v4869_v45, %v4878_v15  ;;  %3179 = vmatpush.msra.mxu0 %v5042_v0  ;;  %v2689_v49 = vpop.f32.mrf.mxu1 }
 0x392   : > { %3183 = vmatpush.msra.mxu0 %v3018_v62  ;;  %v2350_v62 = vadd.f32 %v4693_v23, %v2305_v36 }
 0x396   : > { %v2810_v61 = vpop.f32.mrf.mxu3 }
 0x397   : > { %v4906_v55 = vpop.f32.mrf.mxu2 }
 0x398   : > { %v2694_v3 = vpop.f32.mrf.mxu1 }
 0x39e   : > { %v2813_v58 = vpop.f32.mrf.mxu3 }
 0x39f   : > { %v2762_v24 = vpop.f32.mrf.mxu2 }
 0x3a0   : > { %v2763_v7 = vadd.f32 %v2762_v24, %v2675_v31 }
 0x3a2   : > { %v2811_v14 = vadd.f32 %v2810_v61, %v2763_v7  ;;  %v2565_v61 = vadd.f32 %v4801_v19, %v2449_v9  ;;  %v2354_v7 = vadd.f32 %v4775_v50, %v2309_v6  ;;  %v3406_v50 = vld [vmem:[%s4591_s17 + $0x4] ss:$0 sm:$0xff] }
 0x3a4   : > { %vm2825_vm6 = vcmp.ge.f32.partialorder %v2811_v14, 0.0 }
 0x3a5   : > { %v2830_v20 = vsel %vm2825_vm6, 1.0, %v5028_v16 }
 0x3a6   : > { %v2835_v34 = vadd.f32 %v2830_v20, %v4575_v46  ;;  %v2816_v26 = vpop.f32.mrf.mxu3  ;;  %v2632_v46 = vpop.f32.mrf.mxu0 }
 0x3a7   : > { %v2765_v37 = vpop.f32.mrf.mxu2  ;;  %v2633_v47 = vadd.f32 %v2632_v46, %v2565_v61 }
 0x3a8   : > { %v2766_v35 = vadd.f32 %v2765_v37, %v2680_v32  ;;  %v2860_v54 = vmul.f32 %v3402_v44, %v2835_v34  ;;  %v2358_v32 = vadd.f32 %v5043_v56, %v2313_v17 }
 0x3a9   : > { %v2690_v52 = vadd.f32 %v2689_v49, %v2633_v47 }
 0x3aa   : > { %v2814_v12 = vadd.f32 %v2813_v58, %v2766_v35 }
 0x3ac   : > { %vm2826_vm7 = vcmp.ge.f32.partialorder %v2814_v12, 0.0 }
 0x3ad   : > { %v2831_v15 = vsel %vm2826_vm7, 1.0, %v5028_v16 }
 0x3ae   : > { %v2836_v53 = vadd.f32 %v2831_v15, %v4581_v22  ;;  %v2456_v22 = vadd.f32 %v4869_v45, %v4906_v55  ;;  %v2819_v45 = vpop.f32.mrf.mxu3  ;;  %v2636_v10 = vpop.f32.mrf.mxu0 }
 0x3af   : > { %v2768_v38 = vpop.f32.mrf.mxu2 }
 0x3b0   : > { %v2861_v33 = vmul.f32 %v3403_v1, %v2836_v53  ;;  %v2769_v2 = vadd.f32 %v2768_v38, %v2685_v27  ;;  %v2568_v28 = vadd.f32 %v4876_v30, %v2456_v22  ;;  %v3405_v30 = vld [vmem:[%s4591_s17 + $0x3] ss:$0 sm:$0xff]  ;;  %s3322_s17 = sshll.u32 %s5051_s25, 3 }
 0x3b1   : > { %s492_s14 = scalar_lea.vmem %s5008_s13, %s3322_s17 }
 0x3b2   : > { %v2865_v19 = vadd.f32 %v2861_v33, %v2860_v54  ;;  %v2817_v8 = vadd.f32 %v2816_v26, %v2769_v2  ;;  %v2637_v21 = vadd.f32 %v2636_v10, %v2568_v28 }
 0x3b4   : > { %vm2827_vm8 = vcmp.ge.f32.partialorder %v2817_v8, 0.0  ;;  %v2695_v14 = vadd.f32 %v2694_v3, %v2637_v21 }
 0x3b5   : > { %v2832_v5 = vsel %vm2827_vm8, 1.0, %v5028_v16 }
 0x3b6   : > { %v2837_v59 = vadd.f32 %v2832_v5, %v2350_v62  ;;  %v2822_v58 = vpop.f32.mrf.mxu3 }
 0x3b7   : > { %v2771_v55 = vpop.f32.mrf.mxu2 }
 0x3b8   : > { %v2862_v31 = vmul.f32 %v3404_v13, %v2837_v59  ;;  %v2772_v23 = vadd.f32 %v2771_v55, %v2690_v52 }
 0x3ba   : > { %v2866_v41 = vadd.f32 %v2865_v19, %v2862_v31  ;;  %v2820_v24 = vadd.f32 %v2819_v45, %v2772_v23 }
 0x3bc   : > { %vm2828_vm9 = vcmp.ge.f32.partialorder %v2820_v24, 0.0 }
 0x3bd   : > { %v2833_v60 = vsel %vm2828_vm9, 1.0, %v5028_v16 }
 0x3be   : > { %v2838_v18 = vadd.f32 %v2833_v60, %v2354_v7 }
 0x3bf   : > { %v2774_v25 = vpop.f32.mrf.mxu2 }
 0x3c0   : > { %v2863_v43 = vmul.f32 %v3405_v30, %v2838_v18  ;;  %v2775_v51 = vadd.f32 %v2774_v25, %v2695_v14 }
 0x3c2   : > { %v2867_v39 = vadd.f32 %v2866_v41, %v2863_v43  ;;  %v2823_v29 = vadd.f32 %v2822_v58, %v2775_v51 }
 0x3c4   : > { %vm2829_vm10 = vcmp.ge.f32.partialorder %v2823_v29, 0.0 }
 0x3c5   : > { %v2834_v57 = vsel %vm2829_vm10, 1.0, %v5028_v16 }
 0x3c6   : > { %v2839_v37 = vadd.f32 %v2834_v57, %v2358_v32 }
 0x3c8   : > { %v2864_v35 = vmul.f32 %v3406_v50, %v2839_v37 }
 0x3ca   : > { %v2868_v11 = vadd.f32 %v2867_v39, %v2864_v35 }
 0x3cc   : > { %v2917_v42 = vand.u32 4294901760, %v2868_v11 }
 0x3ce   : > { %v2918_v20 = vsub.f32 %v2868_v11, %v2917_v42  ;;  %3023 = vmatmul.f32.vlgmr.msrb.gmra.mxu1 %v2917_v42 }
 0x3d0   : > { %3077 = vmatmul.f32.vlgmr.msra.gmra.mxu2 %v2918_v20  ;;  %v2919_v48 = vand.u32 4294901760, %v2918_v20 }
 0x3d2   : > { %3116 = vmatmul.f32.vlgmr.msra.gmra.mxu3 %v2919_v48  ;;  %v2920_v63 = vsub.f32 %v2918_v20, %v2919_v48 }
 0x3d4   : > { %v2921_v9 = vand.u32 4294901760, %v2920_v63 }
 0x3d6   : > { %2922 = vmatmul.f32.vlgmr.msrb.gmra.mxu0 %v2921_v9  ;;  %3222 = vmatmul.f32.vlgmr.msra.gmra.mxu1 %v2917_v42 }
 0x3de   : > { %3185 = vmatmul.f32.vlgmr.msra.gmra.mxu0 %v2917_v42 }
 0x44b   : > { %v3024_v12 = vpop.f32.mrf.mxu1 }
 0x453   : > { %v2923_v4 = vpop.f32.mrf.mxu0  ;;  %v3078_v16 = vpop.f32.mrf.mxu2 }
 0x454   : > { %v3025_v40 = vadd.f32 %v3024_v12, %v2923_v4  ;;  %v3223_v15 = vpop.f32.mrf.mxu1 }
 0x455   : > { %v3117_v44 = vpop.f32.mrf.mxu3 }
 0x456   : > { %v3079_v34 = vadd.f32 %v3078_v16, %v3025_v40 }
 0x458   : > { %v3118_v1 = vadd.f32 %v3117_v44, %v3079_v34 }
 0x45b   : > { %v3186_v0 = vpop.f32.mrf.mxu0 }
 0x45c   : > { %v3187_v26 = vadd.f32 %v3186_v0, %v3118_v1 }
 0x45e   : > { %v3224_v61 = vadd.f32 %v3223_v15, %v3187_v26 }
 0x460   : > { %3226 = vst [vmem:[%s492_s14] sm:$0xff] %v3224_v61 }
 0x461 PF: > { %s23_s27 = sadd.s32 1, %s3429_s27   ;;  %s5044_s25 = smov %s3425_s26 }
 0x462   : > { %p20_p6 = scmp.ge.s32.totalorder %s23_s27, 4   ;;  %s5045_s26 = smov %s5047_s28 }
 0x464   :  { %22 = sbr.rel (!%p20_p6) target bundleno = 2 (0x2), region = 105 }

</bundles_post_ra>
